<compile_context>
chip_gen: v7x
topology: tpu7x:2x2x1
jax: 0.10.0
libtpu: 0.0.40
codegen_flags: <defaults>
</compile_context>

<pallas_src>
import jax
import jax.numpy as jnp
from jax.experimental import pallas as pl
from jax.experimental.pallas import tpu as pltpu

NC = 132          # ppceptive input channels
NC_PAD = 256      # zero-padded input channels (128-multiple for clean tiles)
NHIDDEN = 256     # hidden width
NHALF = NHIDDEN // 2
NZ = 256          # representation size
NQ = 7            # hand-query channels (use_pose=False)
NHAND = 5         # raw hand input: position(3) + pitch(1) + yaw(1)
TM = 128          # batch rows per grid step (MXU-aligned)

# Kernel-side parameter order (all 2-D, weights bf16, biases f32 (1, C)).
KPARAM_ORDER = ["w1", "b1", "wr1", "br1", "w2", "b2",
                "wr2h", "we2", "be2", "we3", "be3"]


def _tower_kernel(ppc_ref, qb_ref,
                  w1_ref, b1_ref, wr1_ref, br1_ref, w2_ref, b2_ref,
                  wr2h_ref, we2_ref, be2_ref, we3_ref, be3_ref,
                  rep_ref):
    """Fused TowerRepresentationNetwork MLP chain for a TM-row tile.

    qb_ref already holds hand_enc(hand) @ (Wem_q + Wes_q) + (bem + bes),
    computed outside the kernel, so the enc residual block is a single
    matmul here.
    """
    def dot(a, w_ref):
        # bf16 MXU operands, f32 accumulation.
        return jnp.dot(a.astype(jnp.bfloat16), w_ref[...],
                       preferred_element_type=jnp.float32)

    x = ppc_ref[...]                                              # (TM, NC_PAD) bf16
    # ppc_enc: Conv(132->256) + ReLU
    h1 = jnp.maximum(dot(x, w1_ref) + b1_ref[...], 0.0)
    # ppc_enc: ResidualConv1x1(256->128) (main+skip folded) + ReLU
    h2 = jnp.maximum(dot(h1, wr1_ref) + br1_ref[...], 0.0)
    # ppc_enc: Conv(128->256) + ReLU
    h3 = jnp.maximum(dot(h2, w2_ref) + b2_ref[...], 0.0)
    # enc: ResidualConv1x1(263->128) on concat([h3, q]); q-part + bias folded
    # into qb outside the kernel.
    h4 = jnp.maximum(dot(h3, wr2h_ref) + qb_ref[...], 0.0)
    # enc: Conv(128->256) + ReLU
    h5 = jnp.maximum(dot(h4, we2_ref) + be2_ref[...], 0.0)
    # enc: Conv(256->256 = nz) + ReLU
    h6 = jnp.maximum(dot(h5, we3_ref) + be3_ref[...], 0.0)
    rep_ref[...] = h6


def _linear_init(key, cin, cout):
    """Deterministic conv-style init: U(-1/sqrt(cin), 1/sqrt(cin))."""
    wk, bk = jax.random.split(key)
    bound = 1.0 / (cin ** 0.5)
    w = jax.random.uniform(wk, (cin, cout), jnp.float32, -bound, bound)
    b = jax.random.uniform(bk, (1, cout), jnp.float32, -bound, bound)
    return w, b


def init_params(key):
    """Raw parameters mirroring the PyTorch module structure (all f32)."""
    keys = jax.random.split(key, 8)
    w1, b1 = _linear_init(keys[0], NC, NHIDDEN)            # ppc_enc conv0
    wm, bm = _linear_init(keys[1], NHIDDEN, NHALF)         # ppc_enc residual.main
    ws, bs = _linear_init(keys[2], NHIDDEN, NHALF)         # ppc_enc residual.skip
    w2, b2 = _linear_init(keys[3], NHALF, NHIDDEN)         # ppc_enc conv2
    wem, bem = _linear_init(keys[4], NHIDDEN + NQ, NHALF)  # enc residual.main
    wes, bes = _linear_init(keys[5], NHIDDEN + NQ, NHALF)  # enc residual.skip
    we2, be2 = _linear_init(keys[6], NHALF, NHIDDEN)       # enc conv1
    we3, be3 = _linear_init(keys[7], NHIDDEN, NZ)          # enc conv2
    return dict(w1=w1, b1=b1, wm=wm, bm=bm, ws=ws, bs=bs, w2=w2, b2=b2,
                wem=wem, bem=bem, wes=wes, bes=bes,
                we2=we2, be2=be2, we3=we3, be3=be3)


def prepare_kernel_params(p):
    """Fold residual main+skip, pad w1 to NC_PAD rows, cast weights to bf16."""
    bf16 = jnp.bfloat16
    w1_pad = jnp.zeros((NC_PAD, NHIDDEN), jnp.float32).at[:NC].set(p["w1"])
    kp = {
        "w1": w1_pad.astype(bf16),
        "b1": p["b1"],
        "wr1": (p["wm"] + p["ws"]).astype(bf16),
        "br1": p["bm"] + p["bs"],
        "w2": p["w2"].astype(bf16),
        "b2": p["b2"],
        # enc residual: h3-part folded (goes through the MXU in-kernel)...
        "wr2h": (p["wem"][:NHIDDEN] + p["wes"][:NHIDDEN]).astype(bf16),
        # ... q-part + bias folded and applied in plain JAX (K=7, lane-sparse)
        "wr2q": p["wem"][NHIDDEN:] + p["wes"][NHIDDEN:],
        "br2": p["bem"] + p["bes"],
        "we2": p["we2"].astype(bf16),
        "be2": p["be2"],
        "we3": p["we3"].astype(bf16),
        "be3": p["be3"],
    }
    return kp


def hand_encode(hand):
    """HandEncoder(use_pose=False) on (N, 5) rows -> (N, 7) keys (plain JAX)."""
    pos = hand[:, 0:3]
    pitch = hand[:, 3:4]
    yaw = hand[:, 4:5]
    return jnp.concatenate(
        [pos, jnp.cos(pitch), jnp.sin(pitch), jnp.cos(yaw), jnp.sin(yaw)], axis=1)


def tower_forward(kparams, ppc, hand):
    """Fused repnet on packed (N, NC) ppceptives + (N, NHAND) hands.

    Returns (representations (N, NZ) f32, keys (N, NQ) f32).
    """
    n = ppc.shape[0]

    # Lane-sparse work stays outside the kernel: hand encoder + 7-wide
    # q-projection of the folded enc-residual, fused by XLA into one cheap op.
    q = hand_encode(hand.astype(jnp.float32))                       # (n, NQ)
    qb = q @ kparams["wr2q"] + kparams["br2"]                       # (n, 128)

    n_pad = -(-n // TM) * TM
    ppc_p = jnp.zeros((n_pad, NC_PAD), jnp.bfloat16)
    ppc_p = ppc_p.at[:n, :NC].set(ppc.astype(jnp.bfloat16))
    qb_p = jnp.zeros((n_pad, NHALF), jnp.float32).at[:n].set(qb)

    weight_args = [kparams[k] for k in KPARAM_ORDER]
    # Whole parameter resident in VMEM; constant block index at every step.
    weight_specs = [pl.BlockSpec(w.shape, lambda i: (0, 0)) for w in weight_args]

    in_specs = ([pl.BlockSpec((TM, NC_PAD), lambda i: (i, 0)),
                 pl.BlockSpec((TM, NHALF), lambda i: (i, 0))]
                + weight_specs)
    out_specs = pl.BlockSpec((TM, NZ), lambda i: (i, 0))

    rep = pl.pallas_call(
        _tower_kernel,
        grid=(n_pad // TM,),
        in_specs=in_specs,
        out_specs=out_specs,
        out_shape=jax.ShapeDtypeStruct((n_pad, NZ), jnp.float32),
        compiler_params=pltpu.CompilerParams(
            dimension_semantics=("parallel",)),  # megacore-shardable on v7x
    )(ppc_p, qb_p, *weight_args)
    # Padded rows (n..n_pad) carry bias/ReLU garbage; slice them away.
    return rep[:n], q


def context_network_forward(kparams, contexts):
    """
    contexts: list of (ppceptive, hand) pairs; ppceptive (S_i, 132) or None,
              hand (S_i, 5).
    Returns (representations, keys, with_init_context_sizes) matching the
    PyTorch module (train_init_representation=False -> zero init rep/key).
    """
    context_sizes = [c[0].shape[0] if c[0] is not None else 0 for c in contexts]
    with_init_context_sizes = [s + 1 for s in context_sizes]

    ppcs = [c[0].reshape(-1, NC) for c in contexts if c[0] is not None]
    hands = [c[1].reshape(-1, NHAND) for c in contexts if c[0] is not None]

    rep_all = key_all = None
    if ppcs:
        packed_ppc = jnp.concatenate(ppcs, axis=0)       # pack_sequence
        packed_hand = jnp.concatenate(hands, axis=0)
        rep_all, key_all = tower_forward(kparams, packed_ppc, packed_hand)

    init_rep = jnp.zeros((1, NZ, 1, 1), jnp.float32)
    init_key = jnp.zeros((1, NQ, 1, 1), jnp.float32)

    representations, keys = [], []
    offset = 0
    for s in context_sizes:
        if s > 0:
            r = rep_all[offset:offset + s].reshape(s, NZ, 1, 1)
            k = key_all[offset:offset + s].reshape(s, NQ, 1, 1)
            representations.append(jnp.concatenate([init_rep, r], axis=0))
            keys.append(jnp.concatenate([init_key, k], axis=0))
            offset += s
        else:
            representations.append(init_rep)
            keys.append(init_key)
    return representations, keys, with_init_context_sizes


if __name__ == "__main__":
    root = jax.random.PRNGKey(0)
    pkey, dkey = jax.random.split(root)
    params = init_params(pkey)
    kparams = prepare_kernel_params(params)

    k1, k2, k3, k4 = jax.random.split(dkey, 4)
    # 2 episodes: context sizes 3 and 2
    contexts = [
        (jax.random.normal(k1, (3, NC), jnp.float32),
         jax.random.normal(k2, (3, NHAND), jnp.float32)),
        (jax.random.normal(k3, (2, NC), jnp.float32),
         jax.random.normal(k4, (2, NHAND), jnp.float32)),
    ]

    reps, keys_out, with_init = context_network_forward(kparams, contexts)
    for r in reps:
        jax.block_until_ready(r)
    for k in keys_out:
        jax.block_until_ready(k)

    assert [r.shape for r in reps] == [(4, NZ, 1, 1), (3, NZ, 1, 1)]
    assert [k.shape for k in keys_out] == [(4, NQ, 1, 1), (3, NQ, 1, 1)]
    assert with_init == [4, 3]
    print("KERNEL_OK")
</pallas_src>

<mosaic_0001>
module attributes {stable_mosaic.version = 11 : i64} {
  func.func @_tower_kernel(%arg0: i32, %arg1: memref<128x256xbf16, #tpu.memory_space<vmem>>, %arg2: memref<128x128xf32, #tpu.memory_space<vmem>>, %arg3: memref<256x256xbf16, #tpu.memory_space<vmem>>, %arg4: memref<1x256xf32, #tpu.memory_space<vmem>>, %arg5: memref<256x128xbf16, #tpu.memory_space<vmem>>, %arg6: memref<1x128xf32, #tpu.memory_space<vmem>>, %arg7: memref<128x256xbf16, #tpu.memory_space<vmem>>, %arg8: memref<1x256xf32, #tpu.memory_space<vmem>>, %arg9: memref<256x128xbf16, #tpu.memory_space<vmem>>, %arg10: memref<128x256xbf16, #tpu.memory_space<vmem>>, %arg11: memref<1x256xf32, #tpu.memory_space<vmem>>, %arg12: memref<256x256xbf16, #tpu.memory_space<vmem>>, %arg13: memref<1x256xf32, #tpu.memory_space<vmem>>, %arg14: memref<128x256xf32, #tpu.memory_space<vmem>>) attributes {dimension_semantics = [#tpu.dimension_semantics<parallel>], iteration_bounds = array<i64: 1>, scalar_prefetch = 0 : i64, scratch_operands = 0 : i64, tpu.core_type = #tpu.core_type<tc>, window_params = [{transform_indices = @transform_0, window_bounds = array<i64: 128, 256>}, {transform_indices = @transform_1, window_bounds = array<i64: 128, 128>}, {pipeline_mode = #tpu.pipeline_mode<synchronous>, transform_indices = @transform_2, window_bounds = array<i64: 256, 256>}, {pipeline_mode = #tpu.pipeline_mode<synchronous>, transform_indices = @transform_3, window_bounds = array<i64: 1, 256>}, {pipeline_mode = #tpu.pipeline_mode<synchronous>, transform_indices = @transform_4, window_bounds = array<i64: 256, 128>}, {pipeline_mode = #tpu.pipeline_mode<synchronous>, transform_indices = @transform_5, window_bounds = array<i64: 1, 128>}, {pipeline_mode = #tpu.pipeline_mode<synchronous>, transform_indices = @transform_6, window_bounds = array<i64: 128, 256>}, {pipeline_mode = #tpu.pipeline_mode<synchronous>, transform_indices = @transform_7, window_bounds = array<i64: 1, 256>}, {pipeline_mode = #tpu.pipeline_mode<synchronous>, transform_indices = @transform_8, window_bounds = array<i64: 256, 128>}, {pipeline_mode = #tpu.pipeline_mode<synchronous>, transform_indices = @transform_9, window_bounds = array<i64: 128, 256>}, {pipeline_mode = #tpu.pipeline_mode<synchronous>, transform_indices = @transform_10, window_bounds = array<i64: 1, 256>}, {pipeline_mode = #tpu.pipeline_mode<synchronous>, transform_indices = @transform_11, window_bounds = array<i64: 256, 256>}, {pipeline_mode = #tpu.pipeline_mode<synchronous>, transform_indices = @transform_12, window_bounds = array<i64: 1, 256>}, {transform_indices = @transform_13, window_bounds = array<i64: 128, 256>}]} {
    %c0 = arith.constant 0 : index
    %c0_0 = arith.constant 0 : index
    %0 = vector.load %arg1[%c0, %c0_0] : memref<128x256xbf16, #tpu.memory_space<vmem>>, vector<128x256xbf16>
    %c0_1 = arith.constant 0 : index
    %c0_2 = arith.constant 0 : index
    %1 = vector.load %arg3[%c0_1, %c0_2] : memref<256x256xbf16, #tpu.memory_space<vmem>>, vector<256x256xbf16>
    %cst = arith.constant dense<0.000000e+00> : vector<128x256xf32>
    %2 = tpu.matmul %0, %1, %cst {dimension_numbers = #tpu.dot_dimension_numbers<[1], [0], [0], [1], [0, 0, 1, 1], [], []>} : vector<128x256xbf16>, vector<256x256xbf16>, vector<128x256xf32> -> vector<128x256xf32>
    %c0_3 = arith.constant 0 : index
    %c0_4 = arith.constant 0 : index
    %3 = vector.load %arg4[%c0_3, %c0_4] : memref<1x256xf32, #tpu.memory_space<vmem>>, vector<1x256xf32>
    %4 = vector.broadcast %3 : vector<1x256xf32> to vector<128x256xf32>
    %5 = arith.addf %2, %4 : vector<128x256xf32>
    %cst_5 = arith.constant 0.000000e+00 : f32
    %6 = vector.broadcast %cst_5 : f32 to vector<128x256xf32>
    %7 = arith.maximumf %5, %6 : vector<128x256xf32>
    %8 = arith.truncf %7 : vector<128x256xf32> to vector<128x256xbf16>
    %c0_6 = arith.constant 0 : index
    %c0_7 = arith.constant 0 : index
    %9 = vector.load %arg5[%c0_6, %c0_7] : memref<256x128xbf16, #tpu.memory_space<vmem>>, vector<256x128xbf16>
    %cst_8 = arith.constant dense<0.000000e+00> : vector<128x128xf32>
    %10 = tpu.matmul %8, %9, %cst_8 {dimension_numbers = #tpu.dot_dimension_numbers<[1], [0], [0], [1], [0, 0, 1, 1], [], []>} : vector<128x256xbf16>, vector<256x128xbf16>, vector<128x128xf32> -> vector<128x128xf32>
    %c0_9 = arith.constant 0 : index
    %c0_10 = arith.constant 0 : index
    %11 = vector.load %arg6[%c0_9, %c0_10] : memref<1x128xf32, #tpu.memory_space<vmem>>, vector<1x128xf32>
    %12 = vector.broadcast %11 : vector<1x128xf32> to vector<128x128xf32>
    %13 = arith.addf %10, %12 : vector<128x128xf32>
    %cst_11 = arith.constant 0.000000e+00 : f32
    %14 = vector.broadcast %cst_11 : f32 to vector<128x128xf32>
    %15 = arith.maximumf %13, %14 : vector<128x128xf32>
    %16 = arith.truncf %15 : vector<128x128xf32> to vector<128x128xbf16>
    %c0_12 = arith.constant 0 : index
    %c0_13 = arith.constant 0 : index
    %17 = vector.load %arg7[%c0_12, %c0_13] : memref<128x256xbf16, #tpu.memory_space<vmem>>, vector<128x256xbf16>
    %cst_14 = arith.constant dense<0.000000e+00> : vector<128x256xf32>
    %18 = tpu.matmul %16, %17, %cst_14 {dimension_numbers = #tpu.dot_dimension_numbers<[1], [0], [0], [1], [0, 0, 1, 1], [], []>} : vector<128x128xbf16>, vector<128x256xbf16>, vector<128x256xf32> -> vector<128x256xf32>
    %c0_15 = arith.constant 0 : index
    %c0_16 = arith.constant 0 : index
    %19 = vector.load %arg8[%c0_15, %c0_16] : memref<1x256xf32, #tpu.memory_space<vmem>>, vector<1x256xf32>
    %20 = vector.broadcast %19 : vector<1x256xf32> to vector<128x256xf32>
    %21 = arith.addf %18, %20 : vector<128x256xf32>
    %cst_17 = arith.constant 0.000000e+00 : f32
    %22 = vector.broadcast %cst_17 : f32 to vector<128x256xf32>
    %23 = arith.maximumf %21, %22 : vector<128x256xf32>
    %24 = arith.truncf %23 : vector<128x256xf32> to vector<128x256xbf16>
    %c0_18 = arith.constant 0 : index
    %c0_19 = arith.constant 0 : index
    %25 = vector.load %arg9[%c0_18, %c0_19] : memref<256x128xbf16, #tpu.memory_space<vmem>>, vector<256x128xbf16>
    %cst_20 = arith.constant dense<0.000000e+00> : vector<128x128xf32>
    %26 = tpu.matmul %24, %25, %cst_20 {dimension_numbers = #tpu.dot_dimension_numbers<[1], [0], [0], [1], [0, 0, 1, 1], [], []>} : vector<128x256xbf16>, vector<256x128xbf16>, vector<128x128xf32> -> vector<128x128xf32>
    %c0_21 = arith.constant 0 : index
    %c0_22 = arith.constant 0 : index
    %27 = vector.load %arg2[%c0_21, %c0_22] : memref<128x128xf32, #tpu.memory_space<vmem>>, vector<128x128xf32>
    %28 = arith.addf %26, %27 : vector<128x128xf32>
    %cst_23 = arith.constant 0.000000e+00 : f32
    %29 = vector.broadcast %cst_23 : f32 to vector<128x128xf32>
    %30 = arith.maximumf %28, %29 : vector<128x128xf32>
    %31 = arith.truncf %30 : vector<128x128xf32> to vector<128x128xbf16>
    %c0_24 = arith.constant 0 : index
    %c0_25 = arith.constant 0 : index
    %32 = vector.load %arg10[%c0_24, %c0_25] : memref<128x256xbf16, #tpu.memory_space<vmem>>, vector<128x256xbf16>
    %cst_26 = arith.constant dense<0.000000e+00> : vector<128x256xf32>
    %33 = tpu.matmul %31, %32, %cst_26 {dimension_numbers = #tpu.dot_dimension_numbers<[1], [0], [0], [1], [0, 0, 1, 1], [], []>} : vector<128x128xbf16>, vector<128x256xbf16>, vector<128x256xf32> -> vector<128x256xf32>
    %c0_27 = arith.constant 0 : index
    %c0_28 = arith.constant 0 : index
    %34 = vector.load %arg11[%c0_27, %c0_28] : memref<1x256xf32, #tpu.memory_space<vmem>>, vector<1x256xf32>
    %35 = vector.broadcast %34 : vector<1x256xf32> to vector<128x256xf32>
    %36 = arith.addf %33, %35 : vector<128x256xf32>
    %cst_29 = arith.constant 0.000000e+00 : f32
    %37 = vector.broadcast %cst_29 : f32 to vector<128x256xf32>
    %38 = arith.maximumf %36, %37 : vector<128x256xf32>
    %39 = arith.truncf %38 : vector<128x256xf32> to vector<128x256xbf16>
    %c0_30 = arith.constant 0 : index
    %c0_31 = arith.constant 0 : index
    %40 = vector.load %arg12[%c0_30, %c0_31] : memref<256x256xbf16, #tpu.memory_space<vmem>>, vector<256x256xbf16>
    %cst_32 = arith.constant dense<0.000000e+00> : vector<128x256xf32>
    %41 = tpu.matmul %39, %40, %cst_32 {dimension_numbers = #tpu.dot_dimension_numbers<[1], [0], [0], [1], [0, 0, 1, 1], [], []>} : vector<128x256xbf16>, vector<256x256xbf16>, vector<128x256xf32> -> vector<128x256xf32>
    %c0_33 = arith.constant 0 : index
    %c0_34 = arith.constant 0 : index
    %42 = vector.load %arg13[%c0_33, %c0_34] : memref<1x256xf32, #tpu.memory_space<vmem>>, vector<1x256xf32>
    %43 = vector.broadcast %42 : vector<1x256xf32> to vector<128x256xf32>
    %44 = arith.addf %41, %43 : vector<128x256xf32>
    %cst_35 = arith.constant 0.000000e+00 : f32
    %45 = vector.broadcast %cst_35 : f32 to vector<128x256xf32>
    %46 = arith.maximumf %44, %45 : vector<128x256xf32>
    %c0_36 = arith.constant 0 : index
    %c0_37 = arith.constant 0 : index
    %47 = vector.load %arg14[%c0_36, %c0_37] : memref<128x256xf32, #tpu.memory_space<vmem>>, vector<128x256xf32>
    tpu.vector_store %arg14[%c0_36, %c0_37], %46 {strides = array<i32>} : memref<128x256xf32, #tpu.memory_space<vmem>>, vector<128x256xf32>,
    return
  }
  func.func @transform_0(%arg0: i32) -> (i32, i32) {
    %c0_i32 = arith.constant 0 : i32
    %c0_i32_0 = arith.constant 0 : i32
    return %arg0, %c0_i32 : i32, i32
  }
  func.func @transform_1(%arg0: i32) -> (i32, i32) {
    %c0_i32 = arith.constant 0 : i32
    %c0_i32_0 = arith.constant 0 : i32
    return %arg0, %c0_i32 : i32, i32
  }
  func.func @transform_2(%arg0: i32) -> (i32, i32) {
    %c0_i32 = arith.constant 0 : i32
    %c0_i32_0 = arith.constant 0 : i32
    %c0_i32_1 = arith.constant 0 : i32
    return %c0_i32, %c0_i32_0 : i32, i32
  }
  func.func @transform_3(%arg0: i32) -> (i32, i32) {
    %c0_i32 = arith.constant 0 : i32
    %c0_i32_0 = arith.constant 0 : i32
    %c0_i32_1 = arith.constant 0 : i32
    return %c0_i32, %c0_i32_0 : i32, i32
  }
  func.func @transform_4(%arg0: i32) -> (i32, i32) {
    %c0_i32 = arith.constant 0 : i32
    %c0_i32_0 = arith.constant 0 : i32
    %c0_i32_1 = arith.constant 0 : i32
    return %c0_i32, %c0_i32_0 : i32, i32
  }
  func.func @transform_5(%arg0: i32) -> (i32, i32) {
    %c0_i32 = arith.constant 0 : i32
    %c0_i32_0 = arith.constant 0 : i32
    %c0_i32_1 = arith.constant 0 : i32
    return %c0_i32, %c0_i32_0 : i32, i32
  }
  func.func @transform_6(%arg0: i32) -> (i32, i32) {
    %c0_i32 = arith.constant 0 : i32
    %c0_i32_0 = arith.constant 0 : i32
    %c0_i32_1 = arith.constant 0 : i32
    return %c0_i32, %c0_i32_0 : i32, i32
  }
  func.func @transform_7(%arg0: i32) -> (i32, i32) {
    %c0_i32 = arith.constant 0 : i32
    %c0_i32_0 = arith.constant 0 : i32
    %c0_i32_1 = arith.constant 0 : i32
    return %c0_i32, %c0_i32_0 : i32, i32
  }
  func.func @transform_8(%arg0: i32) -> (i32, i32) {
    %c0_i32 = arith.constant 0 : i32
    %c0_i32_0 = arith.constant 0 : i32
    %c0_i32_1 = arith.constant 0 : i32
    return %c0_i32, %c0_i32_0 : i32, i32
  }
  func.func @transform_9(%arg0: i32) -> (i32, i32) {
    %c0_i32 = arith.constant 0 : i32
    %c0_i32_0 = arith.constant 0 : i32
    %c0_i32_1 = arith.constant 0 : i32
    return %c0_i32, %c0_i32_0 : i32, i32
  }
  func.func @transform_10(%arg0: i32) -> (i32, i32) {
    %c0_i32 = arith.constant 0 : i32
    %c0_i32_0 = arith.constant 0 : i32
    %c0_i32_1 = arith.constant 0 : i32
    return %c0_i32, %c0_i32_0 : i32, i32
  }
  func.func @transform_11(%arg0: i32) -> (i32, i32) {
    %c0_i32 = arith.constant 0 : i32
    %c0_i32_0 = arith.constant 0 : i32
    %c0_i32_1 = arith.constant 0 : i32
    return %c0_i32, %c0_i32_0 : i32, i32
  }
  func.func @transform_12(%arg0: i32) -> (i32, i32) {
    %c0_i32 = arith.constant 0 : i32
    %c0_i32_0 = arith.constant 0 : i32
    %c0_i32_1 = arith.constant 0 : i32
    return %c0_i32, %c0_i32_0 : i32, i32
  }
  func.func @transform_13(%arg0: i32) -> (i32, i32) {
    %c0_i32 = arith.constant 0 : i32
    %c0_i32_0 = arith.constant 0 : i32
    return %arg0, %c0_i32 : i32, i32
  }
}

</mosaic_0001>

<bundles_post_ra>
// kernel: tpu_custom_call.1
= control target key start
LH: loop header
LB: loop body
LE: loop exit
PB: predicated region body
PF: predicated region fallthrough
CT: control target
= control target key end

     0   :  { %18 = vsyncpa [#allocation3], 0  ;;  %s3361_s0 = inlined_call_operand.hbm [shape: bf16[128,256], index: 0, kind: input, shape index: {}]   ;;  %s3362_s1 = inlined_call_operand.hbm [shape: f32[128,128], index: 1, kind: input, shape index: {}]   ;;  %s3363_s2 = inlined_call_operand.hbm [shape: bf16[256,256], index: 2, kind: input, shape index: {}]   ;;  %s3364_s3 = inlined_call_operand.vmem [shape: f32[1,256], index: 3, kind: input, shape index: {}]   ;;  %s3365_s4 = inlined_call_operand.hbm [shape: bf16[256,128], index: 4, kind: input, shape index: {}]   ;;  %s3366_s5 = inlined_call_operand.vmem [shape: f32[1,128], index: 5, kind: input, shape index: {}]   ;;  %s3367_s6 = inlined_call_operand.hbm [shape: bf16[128,256], index: 6, kind: input, shape index: {}]   ;;  %s3368_s7 = inlined_call_operand.vmem [shape: f32[1,256], index: 7, kind: input, shape index: {}]   ;;  %s3369_s8 = inlined_call_operand.hbm [shape: bf16[256,128], index: 8, kind: input, shape index: {}]   ;;  %s3370_s9 = inlined_call_operand.hbm [shape: bf16[128,256], index: 9, kind: input, shape index: {}]   ;;  %s3371_s10 = inlined_call_operand.vmem [shape: f32[1,256], index: 10, kind: input, shape index: {}]   ;;  %s3372_s11 = inlined_call_operand.hbm [shape: bf16[256,256], index: 11, kind: input, shape index: {}]   ;;  %s3373_s12 = inlined_call_operand.vmem [shape: f32[1,256], index: 12, kind: input, shape index: {}]   ;;  %s3374_s13 = inlined_call_operand.hbm [shape: f32[128,256], index: 13, kind: output, shape index: {}]  }
   0x1   :  { %19 = vsyncpa [#allocation6], 0 }
   0x2   :  { %20 = vsyncpa [#allocation9], 0 }
   0x3   :  { %21 = vsyncpa [#allocation12], 0 }
   0x4   :  { %22 = vsyncpa [#allocation15], 0 }
   0x5   :  { %23 = vsyncpa [#allocation4], 0  ;;  %s2808_s25 = smov [#allocation5]   ;;  %s2809_s27 = smov [#allocation8]  }
   0x6   :  { %s41_s26 = sshll.u32 %s2808_s25, 4  ;;  %s67_s28 = sshll.u32 %s2809_s27, 4  ;;  %s42_s26 = int_to_ptr.vmem [resolvable:$true] %s41_s26  ;;  %s2894_s28 = int_to_ptr.vmem [resolvable:$true] %s67_s28 }
   0x7   :  { %s2598_s14 = scalar_lea.hbm %s3362_s1, 2048 }
   0x8   :  { %p2599_p0 = scmp.ne.s32.totalorder %s3362_s1, %s2598_s14  ;;  %p2602_p1 = scmp.lt.u32.totalorder %s2598_s14, %s3362_s1 }
   0xa   :  { %p2604_p2 = pnand %p2602_p1, %p2599_p0 }
   0xc   :  { %2607 = shalt.err (!%p2604_p2)
}
   0xd   :  { %s2608_s19 = scalar_lea.vmem %s42_s26, 2048  ;;  %p2613_p4 = scmp.lt.s32.totalorder %s42_s26, %s42_s26 }
   0xe   :  { %p2609_p3 = scmp.ne.s32.totalorder %s42_s26, %s2608_s19  ;;  %p2614_p5 = scmp.lt.s32.totalorder %s2608_s19, %s2608_s19 }
  0x10   :  { %p2615_p6 = por %p2614_p5, %p2613_p4 }
  0x12   :  { %p2616_p7 = pnand %p2615_p6, %p2609_p3 }
  0x14   :  { %2619 = shalt.err (!%p2616_p7)
}
  0x15   :  { %s2810_s20 = smov 128   ;;  %s2811_s21 = smov 8  }
  0x16   :  { %47 = dma.hbm_to_vmem [thread:$0]  %s3362_s1, 2048, %s42_s26, [#allocation6], %s2810_s20, %s2810_s20, %s2811_s21  }
  0x17   :  { %s2620_s27 = scalar_lea.hbm %s3365_s4, 2048 }
  0x18   :  { %p2621_p8 = scmp.ne.s32.totalorder %s3365_s4, %s2620_s27  ;;  %p2624_p9 = scmp.lt.u32.totalorder %s2620_s27, %s3365_s4 }
  0x1a   :  { %p2626_p10 = pnand %p2624_p9, %p2621_p8 }
  0x1c   :  { %2629 = shalt.err (!%p2626_p10)
}
  0x1d   :  { %s2630_s16 = scalar_lea.vmem %s2894_s28, 2048  ;;  %p2635_p12 = scmp.lt.s32.totalorder %s2894_s28, %s2894_s28 }
  0x1e   :  { %p2631_p11 = scmp.ne.s32.totalorder %s2894_s28, %s2630_s16  ;;  %p2636_p13 = scmp.lt.s32.totalorder %s2630_s16, %s2630_s16 }
  0x20   :  { %p2637_p0 = por %p2636_p13, %p2635_p12 }
  0x22   :  { %p2638_p1 = pnand %p2637_p0, %p2631_p11 }
  0x24   :  { %2641 = shalt.err (!%p2638_p1)
}
  0x25   :  { %s2812_s1 = smov 64   ;;  %s2813_s26 = smov 4  }
  0x26   :  { %73 = dma.hbm_to_vmem [thread:$0]  %s3365_s4, 2048, %s2894_s28, [#allocation9], %s2812_s1, %s2812_s1, %s2813_s26  }
  0x27   :  { %s2814_s19 = smov [#allocation11]   ;;  %s2815_s23 = smov [#allocation2]  }
  0x28   :  { %s95_s22 = sshll.u32 %s2814_s19, 4  ;;  %s29_s24 = sshll.u32 %s2815_s23, 4  ;;  %s96_s22 = int_to_ptr.vmem [resolvable:$true] %s95_s22  ;;  %s2928_s24 = int_to_ptr.vmem [resolvable:$true] %s29_s24 }
  0x29   :  { %s2642_s29 = scalar_lea.hbm %s3369_s8, 2048 }
  0x2a   :  { %p2643_p2 = scmp.ne.s32.totalorder %s3369_s8, %s2642_s29  ;;  %p2646_p3 = scmp.lt.u32.totalorder %s2642_s29, %s3369_s8 }
  0x2c   :  { %p2648_p4 = pnand %p2646_p3, %p2643_p2 }
  0x2e   :  { %2651 = shalt.err (!%p2648_p4)
}
  0x2f   :  { %s2652_s4 = scalar_lea.vmem %s96_s22, 2048  ;;  %p2657_p6 = scmp.lt.s32.totalorder %s96_s22, %s96_s22 }
  0x30   :  { %p2653_p5 = scmp.ne.s32.totalorder %s96_s22, %s2652_s4  ;;  %p2658_p7 = scmp.lt.s32.totalorder %s2652_s4, %s2652_s4 }
  0x32   :  { %p2659_p8 = por %p2658_p7, %p2657_p6 }
  0x34   :  { %p2660_p9 = pnand %p2659_p8, %p2653_p5 }
  0x36   :  { %2663 = shalt.err (!%p2660_p9)
}
  0x37   :  { %101 = dma.hbm_to_vmem [thread:$0]  %s3369_s8, 2048, %s96_s22, [#allocation12], %s2812_s1, %s2812_s1, %s2813_s26  }
  0x38   :  { %s2664_s23 = scalar_lea.hbm %s3361_s0, 2048 }
  0x39   :  { %p2665_p10 = scmp.ne.s32.totalorder %s3361_s0, %s2664_s23  ;;  %p2668_p11 = scmp.lt.u32.totalorder %s2664_s23, %s3361_s0 }
  0x3b   :  { %p2670_p12 = pnand %p2668_p11, %p2665_p10 }
  0x3d   :  { %2673 = shalt.err (!%p2670_p12)
}
  0x3e   :  { %s2674_s14 = scalar_lea.vmem %s2928_s24, 2048  ;;  %p2679_p0 = scmp.lt.s32.totalorder %s2928_s24, %s2928_s24 }
  0x3f   :  { %p2675_p13 = scmp.ne.s32.totalorder %s2928_s24, %s2674_s14  ;;  %p2680_p1 = scmp.lt.s32.totalorder %s2674_s14, %s2674_s14 }
  0x41   :  { %p2681_p2 = por %p2680_p1, %p2679_p0 }
  0x43   :  { %p2682_p3 = pnand %p2681_p2, %p2675_p13 }
  0x45   :  { %2685 = shalt.err (!%p2682_p3)
}
  0x46   :  { %35 = dma.hbm_to_vmem [thread:$0]  %s3361_s0, 2048, %s2928_s24, [#allocation3], %s2810_s20, %s2810_s20, %s2811_s21  }
  0x47   :  { %s2816_s26 = smov [#allocation7]   ;;  %s2817_s15 = smov [#allocation10]  }
  0x48   :  { %s53_s22 = sshll.u32 %s2816_s26, 4  ;;  %s81_s16 = sshll.u32 %s2817_s15, 4  ;;  %s54_s22 = int_to_ptr.vmem [resolvable:$true] %s53_s22  ;;  %s2962_s16 = int_to_ptr.vmem [resolvable:$true] %s81_s16 }
  0x49   :  { %s2686_s17 = scalar_lea.hbm %s3363_s2, 4096 }
  0x4a   :  { %p2687_p4 = scmp.ne.s32.totalorder %s3363_s2, %s2686_s17  ;;  %p2690_p5 = scmp.lt.u32.totalorder %s2686_s17, %s3363_s2 }
  0x4c   :  { %p2692_p6 = pnand %p2690_p5, %p2687_p4 }
  0x4e   :  { %2695 = shalt.err (!%p2692_p6)
}
  0x4f   :  { %s2696_s0 = scalar_lea.vmem %s54_s22, 4096  ;;  %p2701_p8 = scmp.lt.s32.totalorder %s54_s22, %s54_s22 }
  0x50   :  { %p2697_p7 = scmp.ne.s32.totalorder %s54_s22, %s2696_s0  ;;  %p2702_p9 = scmp.lt.s32.totalorder %s2696_s0, %s2696_s0 }
  0x52   :  { %p2703_p10 = por %p2702_p9, %p2701_p8 }
  0x54   :  { %p2704_p11 = pnand %p2703_p10, %p2697_p7 }
  0x56   :  { %2707 = shalt.err (!%p2704_p11)
}
  0x57   :  { %59 = dma.hbm_to_vmem [thread:$0]  %s3363_s2, 4096, %s54_s22, [#allocation6], %s2810_s20, %s2810_s20, %s2811_s21  }
  0x58   :  { %s2708_s14 = scalar_lea.hbm %s3367_s6, 2048 }
  0x59   :  { %p2709_p12 = scmp.ne.s32.totalorder %s3367_s6, %s2708_s14  ;;  %p2712_p13 = scmp.lt.u32.totalorder %s2708_s14, %s3367_s6 }
  0x5b   :  { %p2714_p0 = pnand %p2712_p13, %p2709_p12 }
  0x5d   :  { %2717 = shalt.err (!%p2714_p0)
}
  0x5e   :  { %s2718_s4 = scalar_lea.vmem %s2962_s16, 2048  ;;  %p2723_p2 = scmp.lt.s32.totalorder %s2962_s16, %s2962_s16 }
  0x5f   :  { %p2719_p1 = scmp.ne.s32.totalorder %s2962_s16, %s2718_s4  ;;  %p2724_p3 = scmp.lt.s32.totalorder %s2718_s4, %s2718_s4 }
  0x61   :  { %p2725_p4 = por %p2724_p3, %p2723_p2 }
  0x63   :  { %p2726_p5 = pnand %p2725_p4, %p2719_p1 }
  0x65   :  { %2729 = shalt.err (!%p2726_p5)
}
  0x66   :  { %87 = dma.hbm_to_vmem [thread:$0]  %s3367_s6, 2048, %s2962_s16, [#allocation9], %s2810_s20, %s2810_s20, %s2811_s21  }
  0x67   :  { %s2818_s28 = smov [#allocation13]   ;;  %s2819_s18 = smov [#allocation14]  }
  0x68   :  { %s107_s17 = sshll.u32 %s2818_s28, 4  ;;  %s121_s19 = sshll.u32 %s2819_s18, 4  ;;  %s108_s17 = int_to_ptr.vmem [resolvable:$true] %s107_s17  ;;  %s2999_s19 = int_to_ptr.vmem [resolvable:$true] %s121_s19 }
  0x69   :  { %s2730_s0 = scalar_lea.hbm %s3370_s9, 2048 }
  0x6a   :  { %p2731_p6 = scmp.ne.s32.totalorder %s3370_s9, %s2730_s0  ;;  %p2734_p7 = scmp.lt.u32.totalorder %s2730_s0, %s3370_s9 }
  0x6c   :  { %p2736_p8 = pnand %p2734_p7, %p2731_p6 }
  0x6e   :  { %2739 = shalt.err (!%p2736_p8)
}
  0x6f   :  { %s2740_s6 = scalar_lea.vmem %s108_s17, 2048  ;;  %p2745_p10 = scmp.lt.s32.totalorder %s108_s17, %s108_s17 }
  0x70   :  { %p2741_p9 = scmp.ne.s32.totalorder %s108_s17, %s2740_s6  ;;  %p2746_p11 = scmp.lt.s32.totalorder %s2740_s6, %s2740_s6 }
  0x72   :  { %p2747_p12 = por %p2746_p11, %p2745_p10 }
  0x74   :  { %p2748_p13 = pnand %p2747_p12, %p2741_p9 }
  0x76   :  { %2751 = shalt.err (!%p2748_p13)
}
  0x77   :  { %113 = dma.hbm_to_vmem [thread:$0]  %s3370_s9, 2048, %s108_s17, [#allocation12], %s2810_s20, %s2810_s20, %s2811_s21  }
  0x78   :  { %s2752_s26 = scalar_lea.hbm %s3372_s11, 4096 }
  0x79   :  { %p2753_p0 = scmp.ne.s32.totalorder %s3372_s11, %s2752_s26  ;;  %p2756_p1 = scmp.lt.u32.totalorder %s2752_s26, %s3372_s11 }
  0x7b   :  { %p2758_p2 = pnand %p2756_p1, %p2753_p0 }
  0x7d   :  { %2761 = shalt.err (!%p2758_p2)
}
  0x7e   :  { %s2762_s28 = scalar_lea.vmem %s2999_s19, 4096  ;;  %p2767_p4 = scmp.lt.s32.totalorder %s2999_s19, %s2999_s19 }
  0x7f   :  { %p2763_p3 = scmp.ne.s32.totalorder %s2999_s19, %s2762_s28  ;;  %p2768_p5 = scmp.lt.s32.totalorder %s2762_s28, %s2762_s28 }
  0x81   :  { %p2769_p6 = por %p2768_p5, %p2767_p4 }
  0x83   :  { %p2770_p7 = pnand %p2769_p6, %p2763_p3 }
  0x85   :  { %2773 = shalt.err (!%p2770_p7)
}
  0x86   :  { %127 = dma.hbm_to_vmem [thread:$0]  %s3372_s11, 4096, %s2999_s19, [#allocation15], %s2810_s20, %s2810_s20, %s2811_s21  }
  0x87   :  { %2796 = dma.done.wait [#allocation3], 2048  }
  0x88   :  { %2797 = vsyncadd [#allocation3], 4294965248 }
  0x89   :  { %2798 = dma.done.wait [#allocation6], 6144  }
  0x8a   :  { %2799 = vsyncadd [#allocation6], 4294961152 }
  0x8b   :  { %2800 = dma.done.wait [#allocation9], 4096  }
  0x8c   :  { %2801 = vsyncadd [#allocation9], 4294963200 }
  0x8d   :  { %2802 = dma.done.wait [#allocation12], 4096  }
  0x8e   :  { %2803 = vsyncadd [#allocation12], 4294963200 }
  0x8f   :  { %2804 = dma.done.wait [#allocation15], 4096  }
  0x90   :  { %2805 = vsyncadd [#allocation15], 4294963200  ;;  %v2398_v0 = vld [vmem:[#allocation7 + $0x4] ss:$8 sps:$4 sm:$0xff]   ;;  %v2400_v1 = vld [vmem:[#allocation7] ss:$8 sps:$4 sm:$0xff]  }
  0x91   :  { %455 = vmatprep.subr.bf16.mxu0 %v2398_v0  ;;  %v2401_v2 = vld [vmem:[#allocation7 + $0x14] ss:$8 sps:$4 sm:$0xff]   ;;  %v2403_v3 = vld [vmem:[#allocation7 + $0x10] ss:$8 sps:$4 sm:$0xff]   ;;  %v2404_v4 = vld [vmem:[#allocation7 + $0x24] ss:$8 sps:$4 sm:$0xff]  }
  0x92   :  { %456 = vmatpush1.bf16.msra.mxu0 %v2400_v1  ;;  %v2406_v5 = vld [vmem:[#allocation7 + $0x20] ss:$8 sps:$4 sm:$0xff]   ;;  %v2407_v6 = vld [vmem:[#allocation7 + $0x34] ss:$8 sps:$4 sm:$0xff]   ;;  %v2409_v7 = vld [vmem:[#allocation7 + $0x30] ss:$8 sps:$4 sm:$0xff]   ;;  %v205_v1 = vlaneseq }
  0x93   :  { %457 = vmatprep.subr.bf16.mxu0 %v2401_v2  ;;  %v2410_v8 = vld [vmem:[#allocation7 + $0x44] ss:$8 sps:$4 sm:$0xff]   ;;  %v2412_v9 = vld [vmem:[#allocation7 + $0x40] ss:$8 sps:$4 sm:$0xff]   ;;  %v2413_v10 = vld [vmem:[#allocation7 + $0x54] ss:$8 sps:$4 sm:$0xff]  }
  0x94   :  { %v2415_v11 = vld [vmem:[#allocation7 + $0x50] ss:$8 sps:$4 sm:$0xff]   ;;  %v2416_v12 = vld [vmem:[#allocation7 + $0x64] ss:$8 sps:$4 sm:$0xff]   ;;  %v2418_v14 = vld [vmem:[#allocation7 + $0x60] ss:$8 sps:$4 sm:$0xff]  }
  0x95   :  { %v2448_v13 = vld [vmem:[#allocation2 + $0x4] ss:$8 sps:$4 sm:$0xff]   ;;  %v2419_v15 = vld [vmem:[#allocation7 + $0x74] ss:$8 sps:$4 sm:$0xff]   ;;  %v2421_v16 = vld [vmem:[#allocation7 + $0x70] ss:$8 sps:$4 sm:$0xff]  }
  0x96   :  { %458 = vmatpush1.bf16.msra.mxu0 %v2403_v3  ;;  %487 = vmatprep.mubr.bf16.mxu0 %v2448_v13  ;;  %v2422_v17 = vld [vmem:[#allocation7 + $0x84] ss:$8 sps:$4 sm:$0xff]   ;;  %v2424_v18 = vld [vmem:[#allocation7 + $0x80] ss:$8 sps:$4 sm:$0xff]   ;;  %v2425_v19 = vld [vmem:[#allocation7 + $0x94] ss:$8 sps:$4 sm:$0xff]  }
  0x97   :  { %459 = vmatprep.subr.bf16.mxu0 %v2404_v4  ;;  %v2470_v20 = vld [vmem:[#allocation8 + $0x40] sm:$0xff]   ;;  %v2427_v21 = vld [vmem:[#allocation7 + $0x90] ss:$8 sps:$4 sm:$0xff]   ;;  %v2472_v24 = vld [vmem:[#allocation8 + $0x48] sm:$0xff]   ;;  %v206_v2 = vshrl.u32 %v205_v1, 7 }
  0x98   :  { %v2471_v22 = vld [vmem:[#allocation8] sm:$0xff]   ;;  %2222 = vmatprep.subr.bf16.mxu1 %v2470_v20  ;;  %v2473_v25 = vld [vmem:[#allocation8 + $0x8] sm:$0xff]   ;;  %v2474_v26 = vld [vmem:[#allocation8 + $0x50] sm:$0xff]  }
  0x99   :  { %v2428_v23 = vld [vmem:[#allocation7 + $0xa4] ss:$8 sps:$4 sm:$0xff]   ;;  %2223 = vmatpush3.bf16.msra.mxu1 %v2471_v22  ;;  %v2430_v27 = vld [vmem:[#allocation7 + $0xa0] ss:$8 sps:$4 sm:$0xff]   ;;  %v2431_v28 = vld [vmem:[#allocation7 + $0xb4] ss:$8 sps:$4 sm:$0xff]  }
  0x9a   :  { %460 = vmatpush1.bf16.msra.mxu0 %v2406_v5  ;;  %2224 = vmatprep.subr.bf16.mxu1 %v2472_v24  ;;  %v2475_v29 = vld [vmem:[#allocation8 + $0x10] sm:$0xff]   ;;  %v2476_v30 = vld [vmem:[#allocation8 + $0x58] sm:$0xff]   ;;  %v2434_v32 = vld [vmem:[#allocation7 + $0xc4] ss:$8 sps:$4 sm:$0xff]   ;;  %v3036_v3 = vsub.s32 0, %v206_v2  ;;  %v3041_v5 = vsub.s32 1, %v206_v2 }
  0x9b   :  { %461 = vmatprep.subr.bf16.mxu0 %v2407_v6  ;;  %v2433_v31 = vld [vmem:[#allocation7 + $0xb0] ss:$8 sps:$4 sm:$0xff]   ;;  %v2478_v34 = vld [vmem:[#allocation8 + $0x60] sm:$0xff]   ;;  %v2437_v37 = vld [vmem:[#allocation7 + $0xd4] ss:$8 sps:$4 sm:$0xff]  }
  0x9c   :  { %v2477_v33 = vld [vmem:[#allocation8 + $0x18] sm:$0xff]   ;;  %v2436_v35 = vld [vmem:[#allocation7 + $0xc0] ss:$8 sps:$4 sm:$0xff]   ;;  %v2440_v40 = vld [vmem:[#allocation7 + $0xe4] ss:$8 sps:$4 sm:$0xff]  }
  0x9d   :  { %2225 = vmatpush3.bf16.msra.mxu1 %v2473_v25  ;;  %v2479_v36 = vld [vmem:[#allocation8 + $0x20] sm:$0xff]   ;;  %v2480_v38 = vld [vmem:[#allocation8 + $0x68] sm:$0xff]   ;;  %v2439_v39 = vld [vmem:[#allocation7 + $0xd0] ss:$8 sps:$4 sm:$0xff]  }
  0x9e   :  { %462 = vmatpush1.bf16.msra.mxu0 %v2409_v7  ;;  %2226 = vmatprep.subr.bf16.mxu1 %v2474_v26  ;;  %v2442_v41 = vld [vmem:[#allocation7 + $0xe0] ss:$8 sps:$4 sm:$0xff]   ;;  %v2443_v42 = vld [vmem:[#allocation7 + $0xf4] ss:$8 sps:$4 sm:$0xff]   ;;  %v2445_v43 = vld [vmem:[#allocation7 + $0xf0] ss:$8 sps:$4 sm:$0xff]  }
  0x9f   :  { %463 = vmatprep.subr.bf16.mxu0 %v2410_v8  ;;  %v2446_v44 = vld [vmem:[#allocation2] ss:$8 sps:$4 sm:$0xff]   ;;  %v2449_v45 = vld [vmem:[#allocation2 + $0x14] ss:$8 sps:$4 sm:$0xff]   ;;  %v2451_v46 = vld [vmem:[#allocation2 + $0x10] ss:$8 sps:$4 sm:$0xff]  }
  0xa0   :  { %v2452_v47 = vld [vmem:[#allocation2 + $0x24] ss:$8 sps:$4 sm:$0xff]   ;;  %v2454_v48 = vld [vmem:[#allocation2 + $0x20] ss:$8 sps:$4 sm:$0xff]   ;;  %v2455_v49 = vld [vmem:[#allocation2 + $0x34] ss:$8 sps:$4 sm:$0xff]  }
  0xa1   :  { %2227 = vmatpush3.bf16.msra.mxu1 %v2475_v29  ;;  %v2457_v50 = vld [vmem:[#allocation2 + $0x30] ss:$8 sps:$4 sm:$0xff]   ;;  %v2458_v51 = vld [vmem:[#allocation2 + $0x44] ss:$8 sps:$4 sm:$0xff]   ;;  %v2460_v52 = vld [vmem:[#allocation2 + $0x40] ss:$8 sps:$4 sm:$0xff]  }
  0xa2   :  { %464 = vmatpush1.bf16.msra.mxu0 %v2412_v9  ;;  %2228 = vmatprep.subr.bf16.mxu1 %v2476_v30  ;;  %v2461_v53 = vld [vmem:[#allocation2 + $0x54] ss:$8 sps:$4 sm:$0xff]   ;;  %v2463_v54 = vld [vmem:[#allocation2 + $0x50] ss:$8 sps:$4 sm:$0xff]   ;;  %v2464_v55 = vld [vmem:[#allocation2 + $0x64] ss:$8 sps:$4 sm:$0xff]  }
  0xa3   :  { %465 = vmatprep.subr.bf16.mxu0 %v2413_v10  ;;  %v2466_v56 = vld [vmem:[#allocation2 + $0x60] ss:$8 sps:$4 sm:$0xff]   ;;  %v2467_v57 = vld [vmem:[#allocation2 + $0x74] ss:$8 sps:$4 sm:$0xff]   ;;  %v2469_v58 = vld [vmem:[#allocation2 + $0x70] ss:$8 sps:$4 sm:$0xff]  }
  0xa4   :  { %v2481_v59 = vld [vmem:[#allocation8 + $0x28] sm:$0xff]   ;;  %v2482_v60 = vld [vmem:[#allocation8 + $0x70] sm:$0xff]   ;;  %v2484_v62 = vld [vmem:[#allocation8 + $0x78] sm:$0xff]  }
  0xa5   :  { %2229 = vmatpush3.bf16.msra.mxu1 %v2477_v33  ;;  %v2483_v61 = vld [vmem:[#allocation8 + $0x30] sm:$0xff]   ;;  %v2485_v63 = vld [vmem:[#allocation8 + $0x38] sm:$0xff]   ;;  %v2488_v0 = vld [vmem:[#allocation10 + $0x4] ss:$8 sps:$4 sm:$0xff]  }
  0xa6   :  { %466 = vmatpush1.bf16.msra.mxu0 %v2415_v11  ;;  %2230 = vmatprep.subr.bf16.mxu1 %v2478_v34  ;;  %v203_v4 = vld [vmem:[%s3364_s3] sm:$0x3]  ;;  %v2491_v26 = vld [vmem:[#allocation10 + $0x14] ss:$8 sps:$4 sm:$0xff]  }
  0xa7   :  { %467 = vmatprep.subr.bf16.mxu0 %v2416_v12  ;;  %v3044_v6 = vrot.slane %v203_v4, %v3036_v3  ;;  %v3047_v7 = vrot.slane %v203_v4, %v3041_v5 }
  0xa9   :  { %2231 = vmatpush3.bf16.msra.mxu1 %v2479_v36 }
  0xaa   :  { %468 = vmatpush1.bf16.msra.mxu0 %v2418_v14  ;;  %2232 = vmatprep.subr.bf16.mxu1 %v2480_v38 }
  0xab   :  { %469 = vmatprep.subr.bf16.mxu0 %v2419_v15 }
  0xad   :  { %2233 = vmatpush3.bf16.msra.mxu1 %v2481_v59  ;;  %v2498_v59 = vld [vmem:[#allocation10 + $0x40] ss:$8 sps:$4 sm:$0xff]  }
  0xae   :  { %470 = vmatpush1.bf16.msra.mxu0 %v2421_v16  ;;  %2234 = vmatprep.subr.bf16.mxu1 %v2482_v60 }
  0xaf   :  { %471 = vmatprep.subr.bf16.mxu0 %v2422_v17 }
  0xb1   :  { %2235 = vmatpush3.bf16.msra.mxu1 %v2483_v61 }
  0xb2   :  { %472 = vmatpush1.bf16.msra.mxu0 %v2424_v18  ;;  %2236 = vmatprep.subr.bf16.mxu1 %v2484_v62  ;;  %v2503_v62 = vld [vmem:[#allocation10 + $0x54] ss:$8 sps:$4 sm:$0xff]  }
  0xb3   :  { %473 = vmatprep.subr.bf16.mxu0 %v2425_v19 }
  0xb5   :  { %2237 = vmatpush3.bf16.msra.mxu1 %v2485_v63 }
  0xb6   :  { %474 = vmatpush1.bf16.msra.mxu0 %v2427_v21  ;;  %980 = vmatprep.subr.bf16.mxu1 %v2488_v0 }
  0xb7   :  { %475 = vmatprep.subr.bf16.mxu0 %v2428_v23  ;;  %v2486_v23 = vld [vmem:[#allocation10] ss:$8 sps:$4 sm:$0xff]  }
  0xba   :  { %476 = vmatpush1.bf16.msra.mxu0 %v2430_v27 }
  0xbb   :  { %477 = vmatprep.subr.bf16.mxu0 %v2431_v28 }
  0xbe   :  { %478 = vmatpush1.bf16.msra.mxu0 %v2433_v31 }
  0xbf   :  { %479 = vmatprep.subr.bf16.mxu0 %v2434_v32  ;;  %v2489_v32 = vld [vmem:[#allocation10 + $0x10] ss:$8 sps:$4 sm:$0xff]  }
  0xc2   :  { %480 = vmatpush1.bf16.msra.mxu0 %v2436_v35  ;;  %v2494_v35 = vld [vmem:[#allocation10 + $0x24] ss:$8 sps:$4 sm:$0xff]  }
  0xc3   :  { %481 = vmatprep.subr.bf16.mxu0 %v2437_v37 }
  0xc6   :  { %482 = vmatpush1.bf16.msra.mxu0 %v2439_v39 }
  0xc7   :  { %483 = vmatprep.subr.bf16.mxu0 %v2440_v40 }
  0xca   :  { %484 = vmatpush1.bf16.msra.mxu0 %v2442_v41  ;;  %v2492_v41 = vld [vmem:[#allocation10 + $0x20] ss:$8 sps:$4 sm:$0xff]  }
  0xcb   :  { %485 = vmatprep.subr.bf16.mxu0 %v2443_v42 }
  0xce   :  { %486 = vmatpush1.bf16.msra.mxu0 %v2445_v43 }
  0xd1   :  { %488 = vmatmul.mubr.bf16.vlgmr.msra.gmra.mrb[0].mxu0 %v2446_v44  ;;  %v2497_v44 = vld [vmem:[#allocation10 + $0x34] ss:$8 sps:$4 sm:$0xff]  }
  0xd2   :  { %497 = vmatprep.mubr.bf16.mxu0 %v2449_v45 }
  0xd9   :  { %498 = vmatmul.mubr.bf16.gmra.mrb[4].mxu0 %v2451_v46 }
  0xda   :  { %507 = vmatprep.mubr.bf16.mxu0 %v2452_v47 }
  0xe1   :  { %508 = vmatmul.mubr.bf16.gmra.mrb[8].mxu0 %v2454_v48 }
  0xe2   :  { %517 = vmatprep.mubr.bf16.mxu0 %v2455_v49 }
  0xe9   :  { %518 = vmatmul.mubr.bf16.gmra.mrb[12].mxu0 %v2457_v50  ;;  %v2495_v50 = vld [vmem:[#allocation10 + $0x30] ss:$8 sps:$4 sm:$0xff]  }
  0xea   :  { %527 = vmatprep.mubr.bf16.mxu0 %v2458_v51 }
  0xf1   :  { %528 = vmatmul.mubr.bf16.gmra.mrb[16].mxu0 %v2460_v52 }
  0xf2   :  { %537 = vmatprep.mubr.bf16.mxu0 %v2461_v53  ;;  %v2500_v53 = vld [vmem:[#allocation10 + $0x44] ss:$8 sps:$4 sm:$0xff]  }
  0xf9   :  { %538 = vmatmul.mubr.bf16.gmra.mrb[20].mxu0 %v2463_v54 }
  0xfa   :  { %547 = vmatprep.mubr.bf16.mxu0 %v2464_v55 }
 0x101   :  { %548 = vmatmul.mubr.bf16.gmra.mrb[24].mxu0 %v2466_v56 }
 0x102   :  { %557 = vmatprep.mubr.bf16.mxu0 %v2467_v57 }
 0x109   :  { %558 = vmatmul.mubr.bf16.gmra.mrb[28].mxu0 %v2469_v58 }
 0x1a4   :  { %v489_v8 = vpop.f32.mrb[0].mxu0 }
 0x1a5   :  { %v490_v9 = vadd.f32 %v489_v8, %v3044_v6  ;;  %v491_v10 = vpop.f32.mrb[1].mxu0  ;;  %v2501_v8 = vld [vmem:[#allocation10 + $0x50] ss:$8 sps:$4 sm:$0xff]  }
 0x1a6   :  { %v492_v11 = vadd.f32 %v491_v10, %v3047_v7  ;;  %v493_v12 = vpop.f32.mrb[2].mxu0 }
 0x1a7   :  { %v494_v13 = vadd.f32 %v493_v12, %v3044_v6  ;;  %v495_v14 = vpop.f32.mrb[3].mxu0  ;;  %v568_v16 = vmax.f32 %v490_v9, 0.0 }
 0x1a8   :  { %v496_v15 = vadd.f32 %v495_v14, %v3047_v7  ;;  %v569_v18 = vmax.f32 %v492_v11, 0.0  ;;  %v2506_v11 = vld [vmem:[#allocation10 + $0x64] ss:$8 sps:$4 sm:$0xff]  }
 0x1a9   :  { %v570_v17 = vmax.f32 %v494_v13, 0.0 }
 0x1aa   :  { %v571_v19 = vmax.f32 %v496_v15, 0.0 }
 0x1ab   :  { %v600_v20 = vpack.c.bf16 %v570_v17, %v568_v16  ;;  %v2504_v17 = vld [vmem:[#allocation10 + $0x60] ss:$8 sps:$4 sm:$0xff]  }
 0x1ac   :  { %v499_v21 = vpop.f32.mrb[4].mxu0  ;;  %v601_v22 = vpack.c.bf16 %v571_v19, %v569_v18 }
 0x1ad   :  { %v500_v24 = vadd.f32 %v499_v21, %v3044_v6  ;;  %v501_v25 = vpop.f32.mrb[5].mxu0 }
 0x1ae   :  { %v502_v27 = vadd.f32 %v501_v25, %v3047_v7  ;;  %v503_v28 = vpop.f32.mrb[6].mxu0  ;;  %783 = vmatprep.mubr.bf16.mxu1 %v601_v22 }
 0x1af   :  { %v504_v29 = vadd.f32 %v503_v28, %v3044_v6  ;;  %v505_v30 = vpop.f32.mrb[7].mxu0  ;;  %784 = vmatmul.mubr.bf16.vlgmr.msra.gmra.mrb[0].mxu1 %v600_v20  ;;  %v572_v33 = vmax.f32 %v500_v24, 0.0 }
 0x1b0   :  { %v506_v31 = vadd.f32 %v505_v30, %v3047_v7  ;;  %981 = vmatpush1.bf16.msra.mxu1 %v2486_v23  ;;  %v573_v36 = vmax.f32 %v502_v27, 0.0 }
 0x1b1   :  { %v574_v34 = vmax.f32 %v504_v29, 0.0  ;;  %982 = vmatprep.subr.bf16.mxu1 %v2491_v26 }
 0x1b2   :  { %v575_v37 = vmax.f32 %v506_v31, 0.0 }
 0x1b3   :  { %v602_v38 = vpack.c.bf16 %v574_v34, %v572_v33 }
 0x1b4   :  { %v603_v39 = vpack.c.bf16 %v575_v37, %v573_v36  ;;  %v509_v40 = vpop.f32.mrb[8].mxu0  ;;  %983 = vmatpush1.bf16.msra.mxu1 %v2489_v32 }
 0x1b5   :  { %v510_v42 = vadd.f32 %v509_v40, %v3044_v6  ;;  %v511_v43 = vpop.f32.mrb[9].mxu0  ;;  %984 = vmatprep.subr.bf16.mxu1 %v2494_v35 }
 0x1b6   :  { %v512_v45 = vadd.f32 %v511_v43, %v3047_v7  ;;  %v513_v46 = vpop.f32.mrb[10].mxu0  ;;  %791 = vmatprep.mubr.bf16.mxu1 %v603_v39 }
 0x1b7   :  { %v514_v47 = vadd.f32 %v513_v46, %v3044_v6  ;;  %v515_v48 = vpop.f32.mrb[11].mxu0  ;;  %792 = vmatmul.mubr.bf16.gmra.mrb[4].mxu1 %v602_v38  ;;  %v576_v51 = vmax.f32 %v510_v42, 0.0 }
 0x1b8   :  { %v516_v49 = vadd.f32 %v515_v48, %v3047_v7  ;;  %985 = vmatpush1.bf16.msra.mxu1 %v2492_v41  ;;  %v577_v54 = vmax.f32 %v512_v45, 0.0 }
 0x1b9   :  { %v578_v52 = vmax.f32 %v514_v47, 0.0  ;;  %986 = vmatprep.subr.bf16.mxu1 %v2497_v44 }
 0x1ba   :  { %v579_v55 = vmax.f32 %v516_v49, 0.0 }
 0x1bb   :  { %v604_v56 = vpack.c.bf16 %v578_v52, %v576_v51 }
 0x1bc   :  { %v605_v57 = vpack.c.bf16 %v579_v55, %v577_v54  ;;  %v519_v58 = vpop.f32.mrb[12].mxu0  ;;  %987 = vmatpush1.bf16.msra.mxu1 %v2495_v50 }
 0x1bd   :  { %v520_v60 = vadd.f32 %v519_v58, %v3044_v6  ;;  %v521_v61 = vpop.f32.mrb[13].mxu0  ;;  %988 = vmatprep.subr.bf16.mxu1 %v2500_v53 }
 0x1be   :  { %v522_v63 = vadd.f32 %v521_v61, %v3047_v7  ;;  %v523_v0 = vpop.f32.mrb[14].mxu0  ;;  %799 = vmatprep.mubr.bf16.mxu1 %v605_v57 }
 0x1bf   :  { %v524_v1 = vadd.f32 %v523_v0, %v3044_v6  ;;  %v525_v2 = vpop.f32.mrb[15].mxu0  ;;  %800 = vmatmul.mubr.bf16.gmra.mrb[8].mxu1 %v604_v56  ;;  %v580_v9 = vmax.f32 %v520_v60, 0.0 }
 0x1c0   :  { %v526_v4 = vadd.f32 %v525_v2, %v3047_v7  ;;  %989 = vmatpush1.bf16.msra.mxu1 %v2498_v59  ;;  %v581_v12 = vmax.f32 %v522_v63, 0.0 }
 0x1c1   :  { %v582_v10 = vmax.f32 %v524_v1, 0.0  ;;  %990 = vmatprep.subr.bf16.mxu1 %v2503_v62 }
 0x1c2   :  { %v583_v13 = vmax.f32 %v526_v4, 0.0 }
 0x1c3   :  { %v606_v14 = vpack.c.bf16 %v582_v10, %v580_v9 }
 0x1c4   :  { %v607_v15 = vpack.c.bf16 %v583_v13, %v581_v12  ;;  %v529_v16 = vpop.f32.mrb[16].mxu0  ;;  %991 = vmatpush1.bf16.msra.mxu1 %v2501_v8  ;;  %v2509_v13 = vld [vmem:[#allocation10 + $0x74] ss:$8 sps:$4 sm:$0xff]  }
 0x1c5   :  { %v530_v18 = vadd.f32 %v529_v16, %v3044_v6  ;;  %v531_v19 = vpop.f32.mrb[17].mxu0  ;;  %992 = vmatprep.subr.bf16.mxu1 %v2506_v11  ;;  %v2511_v16 = vld [vmem:[#allocation11] sm:$0xff]  }
 0x1c6   :  { %v532_v20 = vadd.f32 %v531_v19, %v3047_v7  ;;  %v533_v21 = vpop.f32.mrb[18].mxu0  ;;  %807 = vmatprep.mubr.bf16.mxu1 %v607_v15  ;;  %v2820_v15 = vmov 0   ;;  %v2515_v19 = vld [vmem:[#allocation11 + $0x10] sm:$0xff]  }
 0x1c7   :  { %v534_v22 = vadd.f32 %v533_v21, %v3044_v6  ;;  %v535_v23 = vpop.f32.mrb[19].mxu0  ;;  %808 = vmatmul.mubr.bf16.gmra.mrb[12].mxu1 %v606_v14  ;;  %v584_v25 = vmax.f32 %v530_v18, 0.0  ;;  %v2507_v14 = vld [vmem:[#allocation10 + $0x70] ss:$8 sps:$4 sm:$0xff]  }
 0x1c8   :  { %v536_v24 = vadd.f32 %v535_v23, %v3047_v7  ;;  %993 = vmatpush1.bf16.msra.mxu1 %v2504_v17  ;;  %v585_v27 = vmax.f32 %v532_v20, 0.0  ;;  %v2512_v17 = vld [vmem:[#allocation11 + $0x48] sm:$0xff]   ;;  %v2514_v18 = vld [vmem:[#allocation11 + $0x50] sm:$0xff]   ;;  %v2516_v20 = vld [vmem:[#allocation11 + $0x58] sm:$0xff]  }
 0x1c9   :  { %v586_v26 = vmax.f32 %v534_v22, 0.0  ;;  %994 = vmatprep.subr.bf16.mxu1 %v2509_v13  ;;  %v2517_v21 = vld [vmem:[#allocation11 + $0x18] sm:$0xff]   ;;  %v2518_v22 = vld [vmem:[#allocation11 + $0x60] sm:$0xff]  }
 0x1ca   :  { %v587_v28 = vmax.f32 %v536_v24, 0.0  ;;  %v2519_v23 = vld [vmem:[#allocation11 + $0x20] sm:$0xff]   ;;  %v2520_v24 = vld [vmem:[#allocation11 + $0x68] sm:$0xff]  }
 0x1cb   :  { %v608_v29 = vpack.c.bf16 %v586_v26, %v584_v25  ;;  %v2521_v25 = vld [vmem:[#allocation11 + $0x28] sm:$0xff]   ;;  %v2522_v26 = vld [vmem:[#allocation11 + $0x70] sm:$0xff]  }
 0x1cc   :  { %v609_v30 = vpack.c.bf16 %v587_v28, %v585_v27  ;;  %v539_v31 = vpop.f32.mrb[20].mxu0  ;;  %995 = vmatpush1.bf16.msra.mxu1 %v2507_v14  ;;  %v2523_v27 = vld [vmem:[#allocation11 + $0x30] sm:$0xff]  }
 0x1cd   :  { %v540_v32 = vadd.f32 %v539_v31, %v3044_v6  ;;  %v541_v33 = vpop.f32.mrb[21].mxu0 }
 0x1ce   :  { %v542_v34 = vadd.f32 %v541_v33, %v3047_v7  ;;  %v543_v35 = vpop.f32.mrb[22].mxu0  ;;  %815 = vmatprep.mubr.bf16.mxu1 %v609_v30 }
 0x1cf   :  { %v544_v36 = vadd.f32 %v543_v35, %v3044_v6  ;;  %v545_v37 = vpop.f32.mrb[23].mxu0  ;;  %816 = vmatmul.mubr.bf16.gmra.mrb[16].mxu1 %v608_v29  ;;  %v588_v39 = vmax.f32 %v540_v32, 0.0  ;;  %v3085_v29 = vld [vmem:[%s3366_s5] ss:$0 sm:$0xff] }
 0x1d0   :  { %v546_v38 = vadd.f32 %v545_v37, %v3047_v7  ;;  %v589_v41 = vmax.f32 %v542_v34, 0.0 }
 0x1d1   :  { %v590_v40 = vmax.f32 %v544_v36, 0.0 }
 0x1d2   :  { %v591_v42 = vmax.f32 %v546_v38, 0.0 }
 0x1d3   :  { %v610_v43 = vpack.c.bf16 %v590_v40, %v588_v39 }
 0x1d4   :  { %v611_v44 = vpack.c.bf16 %v591_v42, %v589_v41  ;;  %v549_v45 = vpop.f32.mrb[24].mxu0 }
 0x1d5   :  { %v550_v46 = vadd.f32 %v549_v45, %v3044_v6  ;;  %v551_v47 = vpop.f32.mrb[25].mxu0 }
 0x1d6   :  { %v552_v48 = vadd.f32 %v551_v47, %v3047_v7  ;;  %v553_v49 = vpop.f32.mrb[26].mxu0  ;;  %823 = vmatprep.mubr.bf16.mxu1 %v611_v44 }
 0x1d7   :  { %v554_v50 = vadd.f32 %v553_v49, %v3044_v6  ;;  %v555_v51 = vpop.f32.mrb[27].mxu0  ;;  %824 = vmatmul.mubr.bf16.gmra.mrb[20].mxu1 %v610_v43  ;;  %v592_v53 = vmax.f32 %v550_v46, 0.0 }
 0x1d8   :  { %v556_v52 = vadd.f32 %v555_v51, %v3047_v7  ;;  %v593_v55 = vmax.f32 %v552_v48, 0.0 }
 0x1d9   :  { %v594_v54 = vmax.f32 %v554_v50, 0.0 }
 0x1da   :  { %v595_v56 = vmax.f32 %v556_v52, 0.0 }
 0x1db   :  { %v612_v57 = vpack.c.bf16 %v594_v54, %v592_v53 }
 0x1dc   :  { %v613_v58 = vpack.c.bf16 %v595_v56, %v593_v55  ;;  %v559_v59 = vpop.f32.mrb[28].mxu0 }
 0x1dd   :  { %v560_v60 = vadd.f32 %v559_v59, %v3044_v6  ;;  %v561_v61 = vpop.f32.mrb[29].mxu0 }
 0x1de   :  { %v562_v62 = vadd.f32 %v561_v61, %v3047_v7  ;;  %v563_v63 = vpop.f32.mrb[30].mxu0  ;;  %831 = vmatprep.mubr.bf16.mxu1 %v613_v58 }
 0x1df   :  { %v564_v0 = vadd.f32 %v563_v63, %v3044_v6  ;;  %v565_v1 = vpop.f32.mrb[31].mxu0  ;;  %832 = vmatmul.mubr.bf16.gmra.mrb[24].mxu1 %v612_v57  ;;  %v596_v4 = vmax.f32 %v560_v60, 0.0  ;;  %v2510_v6 = vld [vmem:[#allocation11 + $0x40] sm:$0xff]  }
 0x1e0   :  { %v566_v2 = vadd.f32 %v565_v1, %v3047_v7  ;;  %v597_v9 = vmax.f32 %v562_v62, 0.0  ;;  %2286 = vmatprep.subr.bf16.mxu0 %v2510_v6  ;;  %v2513_v7 = vld [vmem:[#allocation11 + $0x8] sm:$0xff]  }
 0x1e1   :  { %v598_v8 = vmax.f32 %v564_v0, 0.0  ;;  %2287 = vmatpush3.bf16.msra.mxu0 %v2511_v16 }
 0x1e2   :  { %v599_v10 = vmax.f32 %v566_v2, 0.0  ;;  %2288 = vmatprep.subr.bf16.mxu0 %v2512_v17 }
 0x1e3   :  { %v614_v11 = vpack.c.bf16 %v598_v8, %v596_v4 }
 0x1e4   :  { %v615_v12 = vpack.c.bf16 %v599_v10, %v597_v9 }
 0x1e5   :  { %2289 = vmatpush3.bf16.msra.mxu0 %v2513_v7 }
 0x1e6   :  { %839 = vmatprep.mubr.bf16.mxu1 %v615_v12  ;;  %2290 = vmatprep.subr.bf16.mxu0 %v2514_v18 }
 0x1e7   :  { %840 = vmatmul.mubr.bf16.gmra.mrb[28].mxu1 %v614_v11 }
 0x1e8   :  { %1012 = vmatprep.mubr.bf16.mxu1 %v2820_v15 }
 0x1e9   :  { %2291 = vmatpush3.bf16.msra.mxu0 %v2515_v19 }
 0x1ea   :  { %2292 = vmatprep.subr.bf16.mxu0 %v2516_v20 }
 0x1ed   :  { %2293 = vmatpush3.bf16.msra.mxu0 %v2517_v21 }
 0x1ee   :  { %2294 = vmatprep.subr.bf16.mxu0 %v2518_v22 }
 0x1f1   :  { %2295 = vmatpush3.bf16.msra.mxu0 %v2519_v23 }
 0x1f2   :  { %2296 = vmatprep.subr.bf16.mxu0 %v2520_v24 }
 0x1f5   :  { %2297 = vmatpush3.bf16.msra.mxu0 %v2521_v25 }
 0x1f6   :  { %2298 = vmatprep.subr.bf16.mxu0 %v2522_v26 }
 0x1f9   :  { %2299 = vmatpush3.bf16.msra.mxu0 %v2523_v27 }
 0x282   :  { %v2238_v28 = vpop.f32.mrb[0].mxu1 }
 0x283   :  { %v2239_v30 = vpop.f32.mrb[1].mxu1 }
 0x284   :  { %v2240_v31 = vadd.f32 %v2239_v30, %v2238_v28  ;;  %v2241_v32 = vpop.f32.mrb[2].mxu1 }
 0x285   :  { %v2242_v33 = vpop.f32.mrb[3].mxu1 }
 0x286   :  { %v786_v34 = vadd.f32 %v2240_v31, %v3085_v29  ;;  %v2243_v35 = vadd.f32 %v2242_v33, %v2241_v32 }
 0x288   :  { %v789_v36 = vadd.f32 %v2243_v35, %v3085_v29  ;;  %v848_v37 = vmax.f32 %v786_v34, 0.0 }
 0x28a   :  { %v849_v38 = vmax.f32 %v789_v36, 0.0  ;;  %v2244_v39 = vpop.f32.mrb[4].mxu1 }
 0x28b   :  { %v2245_v40 = vpop.f32.mrb[5].mxu1 }
 0x28c   :  { %v864_v41 = vpack.c.bf16 %v849_v38, %v848_v37  ;;  %v2246_v42 = vadd.f32 %v2245_v40, %v2244_v39  ;;  %v2247_v43 = vpop.f32.mrb[6].mxu1 }
 0x28d   :  { %v2248_v44 = vpop.f32.mrb[7].mxu1 }
 0x28e   :  { %v794_v45 = vadd.f32 %v2246_v42, %v3085_v29  ;;  %v2249_v46 = vadd.f32 %v2248_v44, %v2247_v43  ;;  %1013 = vmatmul.mubr.bf16.vlgmr.msra.gmra.mrb[32].mxu1 %v864_v41 }
 0x28f   :  { %1022 = vmatprep.mubr.bf16.mxu1 %v2820_v15 }
 0x290   :  { %v797_v47 = vadd.f32 %v2249_v46, %v3085_v29  ;;  %v850_v48 = vmax.f32 %v794_v45, 0.0 }
 0x292   :  { %v851_v49 = vmax.f32 %v797_v47, 0.0  ;;  %v2250_v50 = vpop.f32.mrb[8].mxu1 }
 0x293   :  { %v2251_v51 = vpop.f32.mrb[9].mxu1 }
 0x294   :  { %v2252_v52 = vadd.f32 %v2251_v51, %v2250_v50  ;;  %v2253_v53 = vpop.f32.mrb[10].mxu1  ;;  %v865_v54 = vpack.c.bf16 %v851_v49, %v850_v48 }
 0x295   :  { %v2254_v55 = vpop.f32.mrb[11].mxu1 }
 0x296   :  { %v802_v56 = vadd.f32 %v2252_v52, %v3085_v29  ;;  %v2255_v57 = vadd.f32 %v2254_v55, %v2253_v53  ;;  %1023 = vmatmul.mubr.bf16.gmra.mrb[36].mxu1 %v865_v54 }
 0x297   :  { %1032 = vmatprep.mubr.bf16.mxu1 %v2820_v15 }
 0x298   :  { %v805_v58 = vadd.f32 %v2255_v57, %v3085_v29  ;;  %v852_v59 = vmax.f32 %v802_v56, 0.0  ;;  %v2524_v57 = vld [vmem:[#allocation11 + $0x78] sm:$0xff]  }
 0x299   :  { %2300 = vmatprep.subr.bf16.mxu0 %v2524_v57 }
 0x29a   :  { %v853_v60 = vmax.f32 %v805_v58, 0.0  ;;  %v2256_v61 = vpop.f32.mrb[12].mxu1  ;;  %v2525_v58 = vld [vmem:[#allocation11 + $0x38] sm:$0xff]  }
 0x29b   :  { %v2257_v62 = vpop.f32.mrb[13].mxu1  ;;  %2301 = vmatpush3.bf16.msra.mxu0 %v2525_v58 }
 0x29c   :  { %v2258_v63 = vadd.f32 %v2257_v62, %v2256_v61  ;;  %v2259_v0 = vpop.f32.mrb[14].mxu1  ;;  %v866_v1 = vpack.c.bf16 %v853_v60, %v852_v59  ;;  %v2526_v59 = vld [vmem:[#allocation13] ss:$8 sps:$4 sm:$0xff]   ;;  %v2528_v60 = vld [vmem:[#allocation13 + $0x4] ss:$8 sps:$4 sm:$0xff]  }
 0x29d   :  { %v2260_v2 = vpop.f32.mrb[15].mxu1  ;;  %v2531_v61 = vld [vmem:[#allocation13 + $0x14] ss:$8 sps:$4 sm:$0xff]   ;;  %1514 = vmatprep.subr.bf16.mxu1 %v2528_v60  ;;  %v2529_v62 = vld [vmem:[#allocation13 + $0x10] ss:$8 sps:$4 sm:$0xff]  }
 0x29e   :  { %v810_v4 = vadd.f32 %v2258_v63, %v3085_v29  ;;  %v2261_v8 = vadd.f32 %v2260_v2, %v2259_v0  ;;  %1033 = vmatmul.mubr.bf16.gmra.mrb[40].mxu1 %v866_v1  ;;  %v2534_v63 = vld [vmem:[#allocation13 + $0x24] ss:$8 sps:$4 sm:$0xff]   ;;  %v2537_v0 = vld [vmem:[#allocation13 + $0x34] ss:$8 sps:$4 sm:$0xff]   ;;  %v2535_v1 = vld [vmem:[#allocation13 + $0x30] ss:$8 sps:$4 sm:$0xff]  }
 0x29f   :  { %1042 = vmatprep.mubr.bf16.mxu1 %v2820_v15  ;;  %1515 = vmatpush1.bf16.msra.mxu1 %v2526_v59  ;;  %v2540_v2 = vld [vmem:[#allocation13 + $0x44] ss:$8 sps:$4 sm:$0xff]  }
 0x2a0   :  { %v813_v9 = vadd.f32 %v2261_v8, %v3085_v29  ;;  %v854_v10 = vmax.f32 %v810_v4, 0.0  ;;  %1516 = vmatprep.subr.bf16.mxu1 %v2531_v61  ;;  %v2538_v4 = vld [vmem:[#allocation13 + $0x40] ss:$8 sps:$4 sm:$0xff]   ;;  %v2543_v8 = vld [vmem:[#allocation13 + $0x54] ss:$8 sps:$4 sm:$0xff]  }
 0x2a2   :  { %v855_v11 = vmax.f32 %v813_v9, 0.0  ;;  %v2262_v12 = vpop.f32.mrb[16].mxu1  ;;  %v2541_v9 = vld [vmem:[#allocation13 + $0x50] ss:$8 sps:$4 sm:$0xff]  }
 0x2a3   :  { %v2263_v13 = vpop.f32.mrb[17].mxu1  ;;  %1517 = vmatpush1.bf16.msra.mxu1 %v2529_v62 }
 0x2a4   :  { %v2264_v14 = vadd.f32 %v2263_v13, %v2262_v12  ;;  %v2265_v6 = vpop.f32.mrb[18].mxu1  ;;  %v867_v16 = vpack.c.bf16 %v855_v11, %v854_v10  ;;  %1518 = vmatprep.subr.bf16.mxu1 %v2534_v63  ;;  %v2546_v10 = vld [vmem:[#allocation13 + $0x64] ss:$8 sps:$4 sm:$0xff]   ;;  %v2544_v11 = vld [vmem:[#allocation13 + $0x60] ss:$8 sps:$4 sm:$0xff]  }
 0x2a5   :  { %v2266_v17 = vpop.f32.mrb[19].mxu1  ;;  %v888_v12 = vld [vmem:[%s3368_s7] sm:$0x3] }
 0x2a6   :  { %v818_v7 = vadd.f32 %v2264_v14, %v3085_v29  ;;  %v2267_v18 = vadd.f32 %v2266_v17, %v2265_v6  ;;  %1043 = vmatmul.mubr.bf16.gmra.mrb[44].mxu1 %v867_v16  ;;  %v3115_v13 = vrot.slane %v888_v12, %v3036_v3  ;;  %v3118_v14 = vrot.slane %v888_v12, %v3041_v5 }
 0x2a7   :  { %1052 = vmatprep.mubr.bf16.mxu1 %v2820_v15 }
 0x2a8   :  { %v821_v19 = vadd.f32 %v2267_v18, %v3085_v29  ;;  %v856_v20 = vmax.f32 %v818_v7, 0.0 }
 0x2aa   :  { %v857_v21 = vmax.f32 %v821_v19, 0.0  ;;  %v2268_v22 = vpop.f32.mrb[20].mxu1 }
 0x2ab   :  { %v2269_v23 = vpop.f32.mrb[21].mxu1 }
 0x2ac   :  { %v2270_v24 = vadd.f32 %v2269_v23, %v2268_v22  ;;  %v2271_v25 = vpop.f32.mrb[22].mxu1  ;;  %v868_v26 = vpack.c.bf16 %v857_v21, %v856_v20 }
 0x2ad   :  { %v2272_v27 = vpop.f32.mrb[23].mxu1 }
 0x2ae   :  { %v826_v28 = vadd.f32 %v2270_v24, %v3085_v29  ;;  %v2273_v30 = vadd.f32 %v2272_v27, %v2271_v25  ;;  %1053 = vmatmul.mubr.bf16.gmra.mrb[48].mxu1 %v868_v26 }
 0x2af   :  { %1062 = vmatprep.mubr.bf16.mxu1 %v2820_v15 }
 0x2b0   :  { %v829_v31 = vadd.f32 %v2273_v30, %v3085_v29  ;;  %v858_v32 = vmax.f32 %v826_v28, 0.0 }
 0x2b2   :  { %v859_v33 = vmax.f32 %v829_v31, 0.0  ;;  %v2274_v34 = vpop.f32.mrb[24].mxu1 }
 0x2b3   :  { %v2275_v35 = vpop.f32.mrb[25].mxu1 }
 0x2b4   :  { %v2276_v36 = vadd.f32 %v2275_v35, %v2274_v34  ;;  %v2277_v37 = vpop.f32.mrb[26].mxu1  ;;  %v869_v38 = vpack.c.bf16 %v859_v33, %v858_v32 }
 0x2b5   :  { %v2278_v39 = vpop.f32.mrb[27].mxu1 }
 0x2b6   :  { %v834_v40 = vadd.f32 %v2276_v36, %v3085_v29  ;;  %v2279_v41 = vadd.f32 %v2278_v39, %v2277_v37  ;;  %1063 = vmatmul.mubr.bf16.gmra.mrb[52].mxu1 %v869_v38 }
 0x2b7   :  { %1072 = vmatprep.mubr.bf16.mxu1 %v2820_v15 }
 0x2b8   :  { %v837_v42 = vadd.f32 %v2279_v41, %v3085_v29  ;;  %v860_v43 = vmax.f32 %v834_v40, 0.0 }
 0x2ba   :  { %v861_v44 = vmax.f32 %v837_v42, 0.0  ;;  %v2280_v45 = vpop.f32.mrb[28].mxu1 }
 0x2bb   :  { %v2281_v46 = vpop.f32.mrb[29].mxu1 }
 0x2bc   :  { %v2282_v47 = vadd.f32 %v2281_v46, %v2280_v45  ;;  %v2283_v48 = vpop.f32.mrb[30].mxu1  ;;  %v870_v49 = vpack.c.bf16 %v861_v44, %v860_v43 }
 0x2bd   :  { %v2284_v50 = vpop.f32.mrb[31].mxu1 }
 0x2be   :  { %v842_v51 = vadd.f32 %v2282_v47, %v3085_v29  ;;  %v2285_v52 = vadd.f32 %v2284_v50, %v2283_v48  ;;  %1073 = vmatmul.mubr.bf16.gmra.mrb[56].mxu1 %v870_v49 }
 0x2bf   :  { %1082 = vmatprep.mubr.bf16.mxu1 %v2820_v15 }
 0x2c0   :  { %v845_v53 = vadd.f32 %v2285_v52, %v3085_v29  ;;  %v862_v54 = vmax.f32 %v842_v51, 0.0  ;;  %v2532_v29 = vld [vmem:[#allocation13 + $0x20] ss:$8 sps:$4 sm:$0xff]  }
 0x2c1   :  { %1519 = vmatpush1.bf16.msra.mxu1 %v2532_v29 }
 0x2c2   :  { %v863_v55 = vmax.f32 %v845_v53, 0.0  ;;  %1520 = vmatprep.subr.bf16.mxu1 %v2537_v0 }
 0x2c4   :  { %v871_v56 = vpack.c.bf16 %v863_v55, %v862_v54 }
 0x2c5   :  { %1521 = vmatpush1.bf16.msra.mxu1 %v2535_v1 }
 0x2c6   :  { %1083 = vmatmul.mubr.bf16.gmra.mrb[60].mxu1 %v871_v56  ;;  %1522 = vmatprep.subr.bf16.mxu1 %v2540_v2 }
 0x2c7   :  { %1546 = vmatprep.mubr.bf16.mxu1 %v2820_v15 }
 0x2c9   :  { %1523 = vmatpush1.bf16.msra.mxu1 %v2538_v4 }
 0x2ca   :  { %1524 = vmatprep.subr.bf16.mxu1 %v2543_v8 }
 0x2cd   :  { %1525 = vmatpush1.bf16.msra.mxu1 %v2541_v9 }
 0x2ce   :  { %1526 = vmatprep.subr.bf16.mxu1 %v2546_v10 }
 0x2d1   :  { %1527 = vmatpush1.bf16.msra.mxu1 %v2544_v11 }
 0x361   :  { %v1014_v6 = vpop.f32.mrb[32].mxu1 }
 0x362   :  { %v1015_v16 = vadd.f32 %v1014_v6, %v3115_v13  ;;  %v1016_v17 = vpop.f32.mrb[33].mxu1 }
 0x363   :  { %v1017_v7 = vadd.f32 %v1016_v17, %v3118_v14  ;;  %v1018_v18 = vpop.f32.mrb[34].mxu1 }
 0x364   :  { %v1019_v19 = vadd.f32 %v1018_v18, %v3115_v13  ;;  %v1020_v20 = vpop.f32.mrb[35].mxu1  ;;  %v1093_v22 = vmax.f32 %v1015_v16, 0.0 }
 0x365   :  { %v1021_v21 = vadd.f32 %v1020_v20, %v3118_v14  ;;  %v1094_v24 = vmax.f32 %v1017_v7, 0.0 }
 0x366   :  { %v1095_v23 = vmax.f32 %v1019_v19, 0.0 }
 0x367   :  { %v1096_v25 = vmax.f32 %v1021_v21, 0.0 }
 0x368   :  { %v1125_v26 = vpack.c.bf16 %v1095_v23, %v1093_v22 }
 0x369   :  { %v1126_v27 = vpack.c.bf16 %v1096_v25, %v1094_v24  ;;  %v1024_v28 = vpop.f32.mrb[36].mxu1 }
 0x36a   :  { %v1025_v30 = vadd.f32 %v1024_v28, %v3115_v13  ;;  %v1026_v31 = vpop.f32.mrb[37].mxu1 }
 0x36b   :  { %v1027_v32 = vadd.f32 %v1026_v31, %v3118_v14  ;;  %v1028_v33 = vpop.f32.mrb[38].mxu1  ;;  %1317 = vmatprep.mubr.bf16.mxu0 %v1126_v27 }
 0x36c   :  { %v1029_v34 = vadd.f32 %v1028_v33, %v3115_v13  ;;  %v1030_v35 = vpop.f32.mrb[39].mxu1  ;;  %1318 = vmatmul.mubr.bf16.vlgmr.msra.gmra.mrb[32].mxu0 %v1125_v26  ;;  %v1097_v37 = vmax.f32 %v1025_v30, 0.0 }
 0x36d   :  { %v1031_v36 = vadd.f32 %v1030_v35, %v3118_v14  ;;  %v1098_v39 = vmax.f32 %v1027_v32, 0.0 }
 0x36e   :  { %v1099_v38 = vmax.f32 %v1029_v34, 0.0 }
 0x36f   :  { %v1100_v40 = vmax.f32 %v1031_v36, 0.0 }
 0x370   :  { %v1127_v41 = vpack.c.bf16 %v1099_v38, %v1097_v37 }
 0x371   :  { %v1128_v42 = vpack.c.bf16 %v1100_v40, %v1098_v39  ;;  %v1034_v43 = vpop.f32.mrb[40].mxu1 }
 0x372   :  { %v1035_v44 = vadd.f32 %v1034_v43, %v3115_v13  ;;  %v1036_v45 = vpop.f32.mrb[41].mxu1 }
 0x373   :  { %v1037_v46 = vadd.f32 %v1036_v45, %v3118_v14  ;;  %v1038_v47 = vpop.f32.mrb[42].mxu1  ;;  %1325 = vmatprep.mubr.bf16.mxu0 %v1128_v42 }
 0x374   :  { %v1039_v48 = vadd.f32 %v1038_v47, %v3115_v13  ;;  %v1040_v49 = vpop.f32.mrb[43].mxu1  ;;  %1326 = vmatmul.mubr.bf16.gmra.mrb[36].mxu0 %v1127_v41  ;;  %v1101_v51 = vmax.f32 %v1035_v44, 0.0 }
 0x375   :  { %v1041_v50 = vadd.f32 %v1040_v49, %v3118_v14  ;;  %v1102_v53 = vmax.f32 %v1037_v46, 0.0 }
 0x376   :  { %v1103_v52 = vmax.f32 %v1039_v48, 0.0 }
 0x377   :  { %v1104_v54 = vmax.f32 %v1041_v50, 0.0 }
 0x378   :  { %v1129_v55 = vpack.c.bf16 %v1103_v52, %v1101_v51 }
 0x379   :  { %v1130_v56 = vpack.c.bf16 %v1104_v54, %v1102_v53  ;;  %v1044_v57 = vpop.f32.mrb[44].mxu1 }
 0x37a   :  { %v1045_v58 = vadd.f32 %v1044_v57, %v3115_v13  ;;  %v1046_v59 = vpop.f32.mrb[45].mxu1 }
 0x37b   :  { %v1047_v60 = vadd.f32 %v1046_v59, %v3118_v14  ;;  %v1048_v61 = vpop.f32.mrb[46].mxu1  ;;  %1333 = vmatprep.mubr.bf16.mxu0 %v1130_v56 }
 0x37c   :  { %v1049_v62 = vadd.f32 %v1048_v61, %v3115_v13  ;;  %v1050_v63 = vpop.f32.mrb[47].mxu1  ;;  %1334 = vmatmul.mubr.bf16.gmra.mrb[40].mxu0 %v1129_v55  ;;  %v1105_v0 = vmax.f32 %v1045_v58, 0.0 }
 0x37d   :  { %v1051_v29 = vadd.f32 %v1050_v63, %v3118_v14  ;;  %v1106_v2 = vmax.f32 %v1047_v60, 0.0 }
 0x37e   :  { %v1107_v1 = vmax.f32 %v1049_v62, 0.0 }
 0x37f   :  { %v1108_v4 = vmax.f32 %v1051_v29, 0.0 }
 0x380   :  { %v1131_v8 = vpack.c.bf16 %v1107_v1, %v1105_v0 }
 0x381   :  { %v1132_v9 = vpack.c.bf16 %v1108_v4, %v1106_v2  ;;  %v1054_v10 = vpop.f32.mrb[48].mxu1  ;;  %v2549_v4 = vld [vmem:[#allocation13 + $0x74] ss:$8 sps:$4 sm:$0xff]  }
 0x382   :  { %v1055_v11 = vadd.f32 %v1054_v10, %v3115_v13  ;;  %v1056_v12 = vpop.f32.mrb[49].mxu1  ;;  %1528 = vmatprep.subr.bf16.mxu1 %v2549_v4  ;;  %v2552_v10 = vld [vmem:[#allocation14 + $0x4] ss:$8 sps:$4 sm:$0xff]  }
 0x383   :  { %v1057_v6 = vadd.f32 %v1056_v12, %v3118_v14  ;;  %v1058_v16 = vpop.f32.mrb[50].mxu1  ;;  %1341 = vmatprep.mubr.bf16.mxu0 %v1132_v9  ;;  %v3152_v9 = vld [vmem:[#allocation14] ss:$8 sps:$4 sm:$0xff]   ;;  %1879 = vmatprep.subr.bf16.mxu0 %v2552_v10 }
 0x384   :  { %v1059_v17 = vadd.f32 %v1058_v16, %v3115_v13  ;;  %v1060_v7 = vpop.f32.mrb[51].mxu1  ;;  %1342 = vmatmul.mubr.bf16.gmra.mrb[44].mxu0 %v1131_v8  ;;  %v1109_v19 = vmax.f32 %v1055_v11, 0.0  ;;  %v2547_v8 = vld [vmem:[#allocation13 + $0x70] ss:$8 sps:$4 sm:$0xff]   ;;  %v3160_v11 = vld [vmem:[#allocation14 + $0x24] ss:$8 sps:$4 sm:$0xff]  }
 0x385   :  { %v1061_v18 = vadd.f32 %v1060_v7, %v3118_v14  ;;  %v1110_v21 = vmax.f32 %v1057_v6, 0.0  ;;  %1529 = vmatpush1.bf16.msra.mxu1 %v2547_v8  ;;  %1880 = vmatpush1.bf16.msra.mxu0 %v3152_v9  ;;  %v3163_v12 = vld [vmem:[#allocation14 + $0x20] ss:$8 sps:$4 sm:$0xff]   ;;  %v3166_v6 = vld [vmem:[#allocation14 + $0x34] ss:$8 sps:$4 sm:$0xff]  }
 0x386   :  { %v1111_v20 = vmax.f32 %v1059_v17, 0.0  ;;  %2350 = vmatprep.subr.bf16.mxu1 %v2552_v10  ;;  %v3169_v16 = vld [vmem:[#allocation14 + $0x30] ss:$8 sps:$4 sm:$0xff]   ;;  %v3172_v17 = vld [vmem:[#allocation14 + $0x44] ss:$8 sps:$4 sm:$0xff]  }
 0x387   :  { %v1112_v22 = vmax.f32 %v1061_v18, 0.0  ;;  %v3175_v7 = vld [vmem:[#allocation14 + $0x40] ss:$8 sps:$4 sm:$0xff]   ;;  %v3178_v18 = vld [vmem:[#allocation14 + $0x54] ss:$8 sps:$4 sm:$0xff]  }
 0x388   :  { %v1133_v23 = vpack.c.bf16 %v1111_v20, %v1109_v19  ;;  %v3181_v19 = vld [vmem:[#allocation14 + $0x50] ss:$8 sps:$4 sm:$0xff]   ;;  %v3184_v20 = vld [vmem:[#allocation14 + $0x64] ss:$8 sps:$4 sm:$0xff]  }
 0x389   :  { %v1134_v24 = vpack.c.bf16 %v1112_v22, %v1110_v21  ;;  %v1064_v25 = vpop.f32.mrb[52].mxu1  ;;  %v3187_v21 = vld [vmem:[#allocation14 + $0x60] ss:$8 sps:$4 sm:$0xff]   ;;  %v3190_v22 = vld [vmem:[#allocation14 + $0x74] ss:$8 sps:$4 sm:$0xff]  }
 0x38a   :  { %v1065_v26 = vadd.f32 %v1064_v25, %v3115_v13  ;;  %v1066_v27 = vpop.f32.mrb[53].mxu1  ;;  %v3199_v25 = vld [vmem:[#allocation14 + $0x80] ss:$8 sps:$4 sm:$0xff]  }
 0x38b   :  { %v1067_v28 = vadd.f32 %v1066_v27, %v3118_v14  ;;  %v1068_v30 = vpop.f32.mrb[54].mxu1  ;;  %1349 = vmatprep.mubr.bf16.mxu0 %v1134_v24  ;;  %v3196_v24 = vld [vmem:[#allocation14 + $0x84] ss:$8 sps:$4 sm:$0xff]   ;;  %v3205_v27 = vld [vmem:[#allocation14 + $0x90] ss:$8 sps:$4 sm:$0xff]  }
 0x38c   :  { %v1069_v31 = vadd.f32 %v1068_v30, %v3115_v13  ;;  %v1070_v32 = vpop.f32.mrb[55].mxu1  ;;  %1350 = vmatmul.mubr.bf16.gmra.mrb[48].mxu0 %v1133_v23  ;;  %v1113_v34 = vmax.f32 %v1065_v26, 0.0  ;;  %v3193_v23 = vld [vmem:[#allocation14 + $0x70] ss:$8 sps:$4 sm:$0xff]   ;;  %v3202_v26 = vld [vmem:[#allocation14 + $0x94] ss:$8 sps:$4 sm:$0xff]  }
 0x38d   :  { %v1071_v33 = vadd.f32 %v1070_v32, %v3118_v14  ;;  %v1114_v36 = vmax.f32 %v1067_v28, 0.0  ;;  %v3208_v28 = vld [vmem:[#allocation14 + $0xa4] ss:$8 sps:$4 sm:$0xff]   ;;  %v3211_v30 = vld [vmem:[#allocation14 + $0xa0] ss:$8 sps:$4 sm:$0xff]  }
 0x38e   :  { %v1115_v35 = vmax.f32 %v1069_v31, 0.0  ;;  %v3214_v31 = vld [vmem:[#allocation14 + $0xb4] ss:$8 sps:$4 sm:$0xff]   ;;  %v3217_v32 = vld [vmem:[#allocation14 + $0xb0] ss:$8 sps:$4 sm:$0xff]   ;;  %v1178_v4 = vld [vmem:[#allocation5 + $0x28] sm:$0xff] }
 0x38f   :  { %v1116_v37 = vmax.f32 %v1071_v33, 0.0  ;;  %v3220_v33 = vld [vmem:[#allocation14 + $0xc4] ss:$8 sps:$4 sm:$0xff]  }
 0x390   :  { %v1135_v38 = vpack.c.bf16 %v1115_v35, %v1113_v34  ;;  %v3223_v34 = vld [vmem:[#allocation14 + $0xc0] ss:$8 sps:$4 sm:$0xff]   ;;  %v3226_v35 = vld [vmem:[#allocation14 + $0xd4] ss:$8 sps:$4 sm:$0xff]  }
 0x391   :  { %v1136_v39 = vpack.c.bf16 %v1116_v37, %v1114_v36  ;;  %v1074_v40 = vpop.f32.mrb[56].mxu1  ;;  %v3229_v36 = vld [vmem:[#allocation14 + $0xd0] ss:$8 sps:$4 sm:$0xff]  }
 0x392   :  { %v1075_v41 = vadd.f32 %v1074_v40, %v3115_v13  ;;  %v1076_v42 = vpop.f32.mrb[57].mxu1 }
 0x393   :  { %v1077_v43 = vadd.f32 %v1076_v42, %v3118_v14  ;;  %v1078_v44 = vpop.f32.mrb[58].mxu1  ;;  %1357 = vmatprep.mubr.bf16.mxu0 %v1136_v39  ;;  %v1174_v42 = vld [vmem:[#allocation5 + $0x8] sm:$0xff] }
 0x394   :  { %v1079_v45 = vadd.f32 %v1078_v44, %v3115_v13  ;;  %v1080_v46 = vpop.f32.mrb[59].mxu1  ;;  %1358 = vmatmul.mubr.bf16.gmra.mrb[52].mxu0 %v1135_v38  ;;  %v1117_v48 = vmax.f32 %v1075_v41, 0.0  ;;  %v1173_v38 = vld [vmem:[#allocation5] sm:$0xff] }
 0x395   :  { %v1081_v47 = vadd.f32 %v1080_v46, %v3118_v14  ;;  %v1118_v50 = vmax.f32 %v1077_v43, 0.0 }
 0x396   :  { %v1119_v49 = vmax.f32 %v1079_v45, 0.0 }
 0x397   :  { %v1120_v51 = vmax.f32 %v1081_v47, 0.0 }
 0x398   :  { %v1137_v52 = vpack.c.bf16 %v1119_v49, %v1117_v48 }
 0x399   :  { %v1138_v53 = vpack.c.bf16 %v1120_v51, %v1118_v50  ;;  %v1084_v54 = vpop.f32.mrb[60].mxu1  ;;  %v1175_v50 = vld [vmem:[#allocation5 + $0x10] sm:$0xff] }
 0x39a   :  { %v1085_v55 = vadd.f32 %v1084_v54, %v3115_v13  ;;  %v1086_v56 = vpop.f32.mrb[61].mxu1 }
 0x39b   :  { %v1087_v57 = vadd.f32 %v1086_v56, %v3118_v14  ;;  %v1088_v58 = vpop.f32.mrb[62].mxu1  ;;  %1365 = vmatprep.mubr.bf16.mxu0 %v1138_v53 }
 0x39c   :  { %v1089_v59 = vadd.f32 %v1088_v58, %v3115_v13  ;;  %v1090_v60 = vpop.f32.mrb[63].mxu1  ;;  %1366 = vmatmul.mubr.bf16.gmra.mrb[56].mxu0 %v1137_v52  ;;  %v1121_v62 = vmax.f32 %v1085_v55, 0.0  ;;  %v3154_v13 = vld [vmem:[#allocation14 + $0x14] ss:$8 sps:$4 sm:$0xff]  }
 0x39d   :  { %v1091_v61 = vadd.f32 %v1090_v60, %v3118_v14  ;;  %v1122_v29 = vmax.f32 %v1087_v57, 0.0  ;;  %v3157_v14 = vld [vmem:[#allocation14 + $0x10] ss:$8 sps:$4 sm:$0xff]   ;;  %1881 = vmatprep.subr.bf16.mxu0 %v3154_v13 }
 0x39e   :  { %v1123_v63 = vmax.f32 %v1089_v59, 0.0  ;;  %1882 = vmatpush1.bf16.msra.mxu0 %v3157_v14  ;;  %v1176_v55 = vld [vmem:[#allocation5 + $0x18] sm:$0xff] }
 0x39f   :  { %v1124_v0 = vmax.f32 %v1091_v61, 0.0  ;;  %1883 = vmatprep.subr.bf16.mxu0 %v3160_v11 }
 0x3a0   :  { %v1139_v1 = vpack.c.bf16 %v1123_v63, %v1121_v62  ;;  %v1177_v63 = vld [vmem:[#allocation5 + $0x20] sm:$0xff] }
 0x3a1   :  { %v1140_v2 = vpack.c.bf16 %v1124_v0, %v1122_v29 }
 0x3a2   :  { %1884 = vmatpush1.bf16.msra.mxu0 %v3163_v12 }
 0x3a3   :  { %1373 = vmatprep.mubr.bf16.mxu0 %v1140_v2  ;;  %1885 = vmatprep.subr.bf16.mxu0 %v3166_v6 }
 0x3a4   :  { %1374 = vmatmul.mubr.bf16.gmra.mrb[60].mxu0 %v1139_v1 }
 0x3a6   :  { %1886 = vmatpush1.bf16.msra.mxu0 %v3169_v16 }
 0x3a7   :  { %1887 = vmatprep.subr.bf16.mxu0 %v3172_v17 }
 0x3aa   :  { %1888 = vmatpush1.bf16.msra.mxu0 %v3175_v7 }
 0x3ab   :  { %1889 = vmatprep.subr.bf16.mxu0 %v3178_v18 }
 0x3ae   :  { %1890 = vmatpush1.bf16.msra.mxu0 %v3181_v19 }
 0x3af   :  { %1891 = vmatprep.subr.bf16.mxu0 %v3184_v20 }
 0x3b2   :  { %1892 = vmatpush1.bf16.msra.mxu0 %v3187_v21 }
 0x3b3   :  { %1893 = vmatprep.subr.bf16.mxu0 %v3190_v22 }
 0x3b6   :  { %1894 = vmatpush1.bf16.msra.mxu0 %v3193_v23 }
 0x3b7   :  { %1895 = vmatprep.subr.bf16.mxu0 %v3196_v24 }
 0x3ba   :  { %1896 = vmatpush1.bf16.msra.mxu0 %v3199_v25 }
 0x3bb   :  { %1897 = vmatprep.subr.bf16.mxu0 %v3202_v26 }
 0x3be   :  { %1898 = vmatpush1.bf16.msra.mxu0 %v3205_v27 }
 0x3bf   :  { %1899 = vmatprep.subr.bf16.mxu0 %v3208_v28 }
 0x3c2   :  { %1900 = vmatpush1.bf16.msra.mxu0 %v3211_v30 }
 0x3c3   :  { %1901 = vmatprep.subr.bf16.mxu0 %v3214_v31 }
 0x3c6   :  { %1902 = vmatpush1.bf16.msra.mxu0 %v3217_v32 }
 0x3c7   :  { %1903 = vmatprep.subr.bf16.mxu0 %v3220_v33 }
 0x3ca   :  { %1904 = vmatpush1.bf16.msra.mxu0 %v3223_v34 }
 0x3cb   :  { %1905 = vmatprep.subr.bf16.mxu0 %v3226_v35 }
 0x3ce   :  { %1906 = vmatpush1.bf16.msra.mxu0 %v3229_v36 }
 0x43f   :  { %v2302_v37 = vpop.f32.mrb[32].mxu0 }
 0x440   :  { %v2303_v39 = vpop.f32.mrb[33].mxu0 }
 0x441   :  { %v2304_v40 = vadd.f32 %v2303_v39, %v2302_v37  ;;  %v2305_v41 = vpop.f32.mrb[34].mxu0  ;;  %v1179_v39 = vld [vmem:[#allocation5 + $0x30] sm:$0xff] }
 0x442   :  { %v2306_v43 = vpop.f32.mrb[35].mxu0 }
 0x443   :  { %v1320_v44 = vadd.f32 %v2304_v40, %v1173_v38  ;;  %v2307_v45 = vadd.f32 %v2306_v43, %v2305_v41  ;;  %v1180_v43 = vld [vmem:[#allocation5 + $0x38] sm:$0xff] }
 0x445   :  { %v1323_v46 = vadd.f32 %v2307_v45, %v1174_v42  ;;  %v1382_v47 = vmax.f32 %v1320_v44, 0.0 }
 0x447   :  { %v1383_v48 = vmax.f32 %v1323_v46, 0.0  ;;  %v2308_v49 = vpop.f32.mrb[36].mxu0 }
 0x448   :  { %v2309_v51 = vpop.f32.mrb[37].mxu0 }
 0x449   :  { %v1398_v52 = vpack.c.bf16 %v1383_v48, %v1382_v47  ;;  %v2310_v53 = vadd.f32 %v2309_v51, %v2308_v49  ;;  %v2311_v54 = vpop.f32.mrb[38].mxu0  ;;  %v1181_v48 = vld [vmem:[#allocation5 + $0x40] sm:$0xff] }
 0x44a   :  { %v2312_v56 = vpop.f32.mrb[39].mxu0 }
 0x44b   :  { %v1328_v57 = vadd.f32 %v2310_v53, %v1175_v50  ;;  %v2313_v58 = vadd.f32 %v2312_v56, %v2311_v54  ;;  %1547 = vmatmul.mubr.bf16.vlgmr.msra.gmra.mrb[64].mxu1 %v1398_v52  ;;  %v1182_v52 = vld [vmem:[#allocation5 + $0x48] sm:$0xff] }
 0x44c   :  { %1556 = vmatprep.mubr.bf16.mxu1 %v2820_v15  ;;  %2366 = vmatpush1.bf16.msra.mxu1 %v3152_v9 }
 0x44d   :  { %v1331_v59 = vadd.f32 %v2313_v58, %v1176_v55  ;;  %2351 = vmatprep.subr.bf16.mxu1 %v3154_v13  ;;  %v1384_v60 = vmax.f32 %v1328_v57, 0.0  ;;  %v1183_v57 = vld [vmem:[#allocation5 + $0x50] sm:$0xff] }
 0x44f   :  { %v1385_v61 = vmax.f32 %v1331_v59, 0.0  ;;  %v2314_v62 = vpop.f32.mrb[40].mxu0 }
 0x450   :  { %v2315_v29 = vpop.f32.mrb[41].mxu0  ;;  %2367 = vmatpush1.bf16.msra.mxu1 %v3157_v14 }
 0x451   :  { %v2316_v0 = vadd.f32 %v2315_v29, %v2314_v62  ;;  %v2317_v1 = vpop.f32.mrb[42].mxu0  ;;  %v1399_v2 = vpack.c.bf16 %v1385_v61, %v1384_v60  ;;  %2352 = vmatprep.subr.bf16.mxu1 %v3160_v11  ;;  %v1184_v61 = vld [vmem:[#allocation5 + $0x58] sm:$0xff] }
 0x452   :  { %v2318_v8 = vpop.f32.mrb[43].mxu0 }
 0x453   :  { %v1336_v10 = vadd.f32 %v2316_v0, %v1177_v63  ;;  %v2319_v37 = vadd.f32 %v2318_v8, %v2317_v1  ;;  %1557 = vmatmul.mubr.bf16.gmra.mrb[68].mxu1 %v1399_v2  ;;  %v1185_v1 = vld [vmem:[#allocation5 + $0x60] sm:$0xff] }
 0x454   :  { %1566 = vmatprep.mubr.bf16.mxu1 %v2820_v15  ;;  %2368 = vmatpush1.bf16.msra.mxu1 %v3163_v12 }
 0x455   :  { %v1339_v9 = vadd.f32 %v2319_v37, %v1178_v4  ;;  %2353 = vmatprep.subr.bf16.mxu1 %v3166_v6  ;;  %v1386_v13 = vmax.f32 %v1336_v10, 0.0  ;;  %v1186_v10 = vld [vmem:[#allocation5 + $0x68] sm:$0xff] }
 0x457   :  { %v1387_v38 = vmax.f32 %v1339_v9, 0.0  ;;  %v2320_v14 = vpop.f32.mrb[44].mxu0 }
 0x458   :  { %v2321_v40 = vpop.f32.mrb[45].mxu0  ;;  %2369 = vmatpush1.bf16.msra.mxu1 %v3169_v16 }
 0x459   :  { %v2322_v11 = vadd.f32 %v2321_v40, %v2320_v14  ;;  %v2323_v41 = vpop.f32.mrb[46].mxu0  ;;  %v1400_v42 = vpack.c.bf16 %v1387_v38, %v1386_v13  ;;  %2354 = vmatprep.subr.bf16.mxu1 %v3172_v17  ;;  %v1187_v14 = vld [vmem:[#allocation5 + $0x70] sm:$0xff] }
 0x45a   :  { %v2324_v44 = vpop.f32.mrb[47].mxu0 }
 0x45b   :  { %v1344_v45 = vadd.f32 %v2322_v11, %v1179_v39  ;;  %v2325_v46 = vadd.f32 %v2324_v44, %v2323_v41  ;;  %1567 = vmatmul.mubr.bf16.gmra.mrb[72].mxu1 %v1400_v42  ;;  %v1188_v41 = vld [vmem:[#allocation5 + $0x78] sm:$0xff] }
 0x45c   :  { %1576 = vmatprep.mubr.bf16.mxu1 %v2820_v15  ;;  %2370 = vmatpush1.bf16.msra.mxu1 %v3175_v7 }
 0x45d   :  { %v1347_v12 = vadd.f32 %v2325_v46, %v1180_v43  ;;  %2355 = vmatprep.subr.bf16.mxu1 %v3178_v18  ;;  %v1388_v6 = vmax.f32 %v1344_v45, 0.0  ;;  %v2594_v46 = vld [vmem:[#allocation14 + $0xe4] ss:$8 sps:$4 sm:$0xff]  }
 0x45e   :  { %1907 = vmatprep.subr.bf16.mxu0 %v2594_v46 }
 0x45f   :  { %v1389_v47 = vmax.f32 %v1347_v12, 0.0  ;;  %v2326_v16 = vpop.f32.mrb[48].mxu0  ;;  %v2597_v12 = vld [vmem:[#allocation14 + $0xf4] ss:$8 sps:$4 sm:$0xff]  }
 0x460   :  { %v2327_v49 = vpop.f32.mrb[49].mxu0  ;;  %2371 = vmatpush1.bf16.msra.mxu1 %v3181_v19 }
 0x461   :  { %v2328_v17 = vadd.f32 %v2327_v49, %v2326_v16  ;;  %v2329_v50 = vpop.f32.mrb[50].mxu0  ;;  %v1401_v51 = vpack.c.bf16 %v1389_v47, %v1388_v6  ;;  %2356 = vmatprep.subr.bf16.mxu1 %v3184_v20  ;;  %v2595_v6 = vld [vmem:[#allocation14 + $0xf0] ss:$8 sps:$4 sm:$0xff]  }
 0x462   :  { %v2330_v53 = vpop.f32.mrb[51].mxu0 }
 0x463   :  { %v1352_v54 = vadd.f32 %v2328_v17, %v1181_v48  ;;  %v2331_v55 = vadd.f32 %v2330_v53, %v2329_v50  ;;  %1577 = vmatmul.mubr.bf16.gmra.mrb[76].mxu1 %v1401_v51 }
 0x464   :  { %1586 = vmatprep.mubr.bf16.mxu1 %v2820_v15  ;;  %2372 = vmatpush1.bf16.msra.mxu1 %v3187_v21 }
 0x465   :  { %v1355_v7 = vadd.f32 %v2331_v55, %v1182_v52  ;;  %2357 = vmatprep.subr.bf16.mxu1 %v3190_v22  ;;  %v1390_v18 = vmax.f32 %v1352_v54, 0.0 }
 0x467   :  { %v1391_v56 = vmax.f32 %v1355_v7, 0.0  ;;  %v2332_v19 = vpop.f32.mrb[52].mxu0 }
 0x468   :  { %v2333_v58 = vpop.f32.mrb[53].mxu0  ;;  %2373 = vmatpush1.bf16.msra.mxu1 %v3193_v23 }
 0x469   :  { %v2334_v20 = vadd.f32 %v2333_v58, %v2332_v19  ;;  %v2335_v59 = vpop.f32.mrb[54].mxu0  ;;  %v1402_v60 = vpack.c.bf16 %v1391_v56, %v1390_v18  ;;  %2358 = vmatprep.subr.bf16.mxu1 %v3196_v24 }
 0x46a   :  { %v2336_v62 = vpop.f32.mrb[55].mxu0 }
 0x46b   :  { %v1360_v63 = vadd.f32 %v2334_v20, %v1183_v57  ;;  %v2337_v29 = vadd.f32 %v2336_v62, %v2335_v59  ;;  %1587 = vmatmul.mubr.bf16.gmra.mrb[80].mxu1 %v1402_v60 }
 0x46c   :  { %1596 = vmatprep.mubr.bf16.mxu1 %v2820_v15  ;;  %2374 = vmatpush1.bf16.msra.mxu1 %v3199_v25 }
 0x46d   :  { %v1363_v21 = vadd.f32 %v2337_v29, %v1184_v61  ;;  %2359 = vmatprep.subr.bf16.mxu1 %v3202_v26  ;;  %v1392_v22 = vmax.f32 %v1360_v63, 0.0 }
 0x46f   :  { %v1393_v0 = vmax.f32 %v1363_v21, 0.0  ;;  %v2338_v23 = vpop.f32.mrb[56].mxu0 }
 0x470   :  { %v2339_v2 = vpop.f32.mrb[57].mxu0  ;;  %2375 = vmatpush1.bf16.msra.mxu1 %v3205_v27 }
 0x471   :  { %v2340_v24 = vadd.f32 %v2339_v2, %v2338_v23  ;;  %v2341_v4 = vpop.f32.mrb[58].mxu0  ;;  %v1403_v8 = vpack.c.bf16 %v1393_v0, %v1392_v22  ;;  %2360 = vmatprep.subr.bf16.mxu1 %v3208_v28 }
 0x472   :  { %v2342_v37 = vpop.f32.mrb[59].mxu0 }
 0x473   :  { %v1368_v9 = vadd.f32 %v2340_v24, %v1185_v1  ;;  %v2343_v13 = vadd.f32 %v2342_v37, %v2341_v4  ;;  %1597 = vmatmul.mubr.bf16.gmra.mrb[84].mxu1 %v1403_v8 }
 0x474   :  { %1606 = vmatprep.mubr.bf16.mxu1 %v2820_v15  ;;  %2376 = vmatpush1.bf16.msra.mxu1 %v3211_v30 }
 0x475   :  { %v1371_v25 = vadd.f32 %v2343_v13, %v1186_v10  ;;  %2361 = vmatprep.subr.bf16.mxu1 %v3214_v31  ;;  %v1394_v26 = vmax.f32 %v1368_v9, 0.0 }
 0x477   :  { %v1395_v38 = vmax.f32 %v1371_v25, 0.0  ;;  %v2344_v27 = vpop.f32.mrb[60].mxu0 }
 0x478   :  { %v2345_v39 = vpop.f32.mrb[61].mxu0  ;;  %2377 = vmatpush1.bf16.msra.mxu1 %v3217_v32 }
 0x479   :  { %v2346_v28 = vadd.f32 %v2345_v39, %v2344_v27  ;;  %v2347_v40 = vpop.f32.mrb[62].mxu0  ;;  %v1404_v11 = vpack.c.bf16 %v1395_v38, %v1394_v26  ;;  %2362 = vmatprep.subr.bf16.mxu1 %v3220_v33  ;;  %v2592_v33 = vld [vmem:[#allocation14 + $0xe0] ss:$8 sps:$4 sm:$0xff]  }
 0x47a   :  { %v2348_v42 = vpop.f32.mrb[63].mxu0  ;;  %1908 = vmatpush1.bf16.msra.mxu0 %v2592_v33 }
 0x47b   :  { %v1376_v43 = vadd.f32 %v2346_v28, %v1187_v14  ;;  %v2349_v44 = vadd.f32 %v2348_v42, %v2347_v40  ;;  %1607 = vmatmul.mubr.bf16.gmra.mrb[88].mxu1 %v1404_v11  ;;  %1909 = vmatprep.subr.bf16.mxu0 %v2597_v12 }
 0x47c   :  { %1616 = vmatprep.mubr.bf16.mxu1 %v2820_v15  ;;  %2378 = vmatpush1.bf16.msra.mxu1 %v3223_v34  ;;  %v1422_v15 = vld [vmem:[%s3371_s10] sm:$0x3] }
 0x47d   :  { %v1379_v30 = vadd.f32 %v2349_v44, %v1188_v41  ;;  %2363 = vmatprep.subr.bf16.mxu1 %v3226_v35  ;;  %v1396_v31 = vmax.f32 %v1376_v43, 0.0  ;;  %v3271_v34 = vrot.slane %v1422_v15, %v3036_v3  ;;  %v3274_v35 = vrot.slane %v1422_v15, %v3041_v5 }
 0x47e   :  { %1910 = vmatpush1.bf16.msra.mxu0 %v2595_v6 }
 0x47f   :  { %v1397_v45 = vmax.f32 %v1379_v30, 0.0 }
 0x480   :  { %2379 = vmatpush1.bf16.msra.mxu1 %v3229_v36 }
 0x481   :  { %v1405_v32 = vpack.c.bf16 %v1397_v45, %v1396_v31  ;;  %2364 = vmatprep.subr.bf16.mxu1 %v2594_v46 }
 0x483   :  { %1617 = vmatmul.mubr.bf16.gmra.mrb[92].mxu1 %v1405_v32 }
 0x484   :  { %2380 = vmatpush1.bf16.msra.mxu1 %v2592_v33 }
 0x485   :  { %2365 = vmatprep.subr.bf16.mxu1 %v2597_v12 }
 0x488   :  { %2381 = vmatpush1.bf16.msra.mxu1 %v2595_v6 }
 0x51e   :  { %v1548_v36 = vpop.f32.mrb[64].mxu1 }
 0x51f   :  { %v1549_v47 = vadd.f32 %v1548_v36, %v3271_v34  ;;  %v1550_v16 = vpop.f32.mrb[65].mxu1 }
 0x520   :  { %v1551_v48 = vadd.f32 %v1550_v16, %v3274_v35  ;;  %v1552_v49 = vpop.f32.mrb[66].mxu1 }
 0x521   :  { %v1553_v17 = vadd.f32 %v1552_v49, %v3271_v34  ;;  %v1554_v50 = vpop.f32.mrb[67].mxu1  ;;  %v1627_v52 = vmax.f32 %v1549_v47, 0.0 }
 0x522   :  { %v1555_v51 = vadd.f32 %v1554_v50, %v3274_v35  ;;  %v1628_v54 = vmax.f32 %v1551_v48, 0.0 }
 0x523   :  { %v1629_v53 = vmax.f32 %v1553_v17, 0.0 }
 0x524   :  { %v1630_v55 = vmax.f32 %v1555_v51, 0.0 }
 0x525   :  { %v1659_v7 = vpack.c.bf16 %v1629_v53, %v1627_v52 }
 0x526   :  { %v1660_v18 = vpack.c.bf16 %v1630_v55, %v1628_v54  ;;  %v1558_v56 = vpop.f32.mrb[68].mxu1 }
 0x527   :  { %v1559_v19 = vadd.f32 %v1558_v56, %v3271_v34  ;;  %v1560_v57 = vpop.f32.mrb[69].mxu1 }
 0x528   :  { %v1561_v58 = vadd.f32 %v1560_v57, %v3274_v35  ;;  %v1562_v20 = vpop.f32.mrb[70].mxu1  ;;  %1911 = vmatprep.mubr.bf16.mxu0 %v1660_v18 }
 0x529   :  { %v1563_v59 = vadd.f32 %v1562_v20, %v3271_v34  ;;  %v1564_v60 = vpop.f32.mrb[71].mxu1  ;;  %1912 = vmatmul.mubr.bf16.vlgmr.msra.gmra.mrb[64].mxu0 %v1659_v7  ;;  %v1631_v62 = vmax.f32 %v1559_v19, 0.0 }
 0x52a   :  { %v1565_v61 = vadd.f32 %v1564_v60, %v3274_v35  ;;  %v1632_v29 = vmax.f32 %v1561_v58, 0.0 }
 0x52b   :  { %v1633_v63 = vmax.f32 %v1563_v59, 0.0 }
 0x52c   :  { %v1634_v21 = vmax.f32 %v1565_v61, 0.0 }
 0x52d   :  { %v1661_v22 = vpack.c.bf16 %v1633_v63, %v1631_v62 }
 0x52e   :  { %v1662_v0 = vpack.c.bf16 %v1634_v21, %v1632_v29  ;;  %v1568_v23 = vpop.f32.mrb[72].mxu1 }
 0x52f   :  { %v1569_v1 = vadd.f32 %v1568_v23, %v3271_v34  ;;  %v1570_v2 = vpop.f32.mrb[73].mxu1 }
 0x530   :  { %v1571_v24 = vadd.f32 %v1570_v2, %v3274_v35  ;;  %v1572_v4 = vpop.f32.mrb[74].mxu1  ;;  %1921 = vmatprep.mubr.bf16.mxu0 %v1662_v0 }
 0x531   :  { %v1573_v8 = vadd.f32 %v1572_v4, %v3271_v34  ;;  %v1574_v10 = vpop.f32.mrb[75].mxu1  ;;  %1922 = vmatmul.mubr.bf16.gmra.mrb[68].mxu0 %v1661_v22  ;;  %v1635_v9 = vmax.f32 %v1569_v1, 0.0 }
 0x532   :  { %v1575_v37 = vadd.f32 %v1574_v10, %v3274_v35  ;;  %v1636_v25 = vmax.f32 %v1571_v24, 0.0 }
 0x533   :  { %v1637_v13 = vmax.f32 %v1573_v8, 0.0 }
 0x534   :  { %v1638_v26 = vmax.f32 %v1575_v37, 0.0 }
 0x535   :  { %v1663_v38 = vpack.c.bf16 %v1637_v13, %v1635_v9 }
 0x536   :  { %v1664_v27 = vpack.c.bf16 %v1638_v26, %v1636_v25  ;;  %v1578_v14 = vpop.f32.mrb[76].mxu1 }
 0x537   :  { %v1579_v39 = vadd.f32 %v1578_v14, %v3271_v34  ;;  %v1580_v28 = vpop.f32.mrb[77].mxu1 }
 0x538   :  { %v1581_v40 = vadd.f32 %v1580_v28, %v3274_v35  ;;  %v1582_v11 = vpop.f32.mrb[78].mxu1  ;;  %1931 = vmatprep.mubr.bf16.mxu0 %v1664_v27 }
 0x539   :  { %v1583_v41 = vadd.f32 %v1582_v11, %v3271_v34  ;;  %v1584_v42 = vpop.f32.mrb[79].mxu1  ;;  %1932 = vmatmul.mubr.bf16.gmra.mrb[72].mxu0 %v1663_v38  ;;  %v1639_v44 = vmax.f32 %v1579_v39, 0.0 }
 0x53a   :  { %v1585_v43 = vadd.f32 %v1584_v42, %v3274_v35  ;;  %v1640_v31 = vmax.f32 %v1581_v40, 0.0 }
 0x53b   :  { %v1641_v30 = vmax.f32 %v1583_v41, 0.0 }
 0x53c   :  { %v1642_v45 = vmax.f32 %v1585_v43, 0.0 }
 0x53d   :  { %v1665_v32 = vpack.c.bf16 %v1641_v30, %v1639_v44 }
 0x53e   :  { %v1666_v46 = vpack.c.bf16 %v1642_v45, %v1640_v31  ;;  %v1588_v33 = vpop.f32.mrb[80].mxu1  ;;  %v1707_v31 = vld [vmem:[%s3373_s12] sm:$0x3]  ;;  %s2821_s12 = smov [#allocation16]  }
 0x53f   :  { %v1589_v12 = vadd.f32 %v1588_v33, %v3271_v34  ;;  %v1590_v6 = vpop.f32.mrb[81].mxu1  ;;  %v3312_v45 = vrot.slane %v1707_v31, %v3036_v3  ;;  %s2061_s25 = sshll.u32 %s2821_s12, 4  ;;  %s2062_s25 = int_to_ptr.vmem [resolvable:$true] %s2061_s25 }
 0x540   :  { %v1591_v15 = vadd.f32 %v1590_v6, %v3274_v35  ;;  %v1592_v36 = vpop.f32.mrb[82].mxu1  ;;  %1941 = vmatprep.mubr.bf16.mxu0 %v1666_v46  ;;  %s2774_s0 = scalar_lea.vmem %s2062_s25, 4096  ;;  %p2779_p9 = scmp.lt.s32.totalorder %s2062_s25, %s2062_s25 }
 0x541   :  { %v1593_v47 = vadd.f32 %v1592_v36, %v3271_v34  ;;  %v1594_v16 = vpop.f32.mrb[83].mxu1  ;;  %1942 = vmatmul.mubr.bf16.gmra.mrb[76].mxu0 %v1665_v32  ;;  %v1643_v49 = vmax.f32 %v1589_v12, 0.0  ;;  %p2775_p8 = scmp.ne.s32.totalorder %s2062_s25, %s2774_s0  ;;  %p2780_p10 = scmp.lt.s32.totalorder %s2774_s0, %s2774_s0 }
 0x542   :  { %v1595_v48 = vadd.f32 %v1594_v16, %v3274_v35  ;;  %v1644_v50 = vmax.f32 %v1591_v15, 0.0 }
 0x543   :  { %v1645_v17 = vmax.f32 %v1593_v47, 0.0  ;;  %p2781_p11 = por %p2780_p10, %p2779_p9 }
 0x544   :  { %v1646_v51 = vmax.f32 %v1595_v48, 0.0 }
 0x545   :  { %v1667_v52 = vpack.c.bf16 %v1645_v17, %v1643_v49  ;;  %p2782_p12 = pnand %p2781_p11, %p2775_p8 }
 0x546   :  { %v1668_v53 = vpack.c.bf16 %v1646_v51, %v1644_v50  ;;  %v1598_v54 = vpop.f32.mrb[84].mxu1 }
 0x547   :  { %v1599_v55 = vadd.f32 %v1598_v54, %v3271_v34  ;;  %v1600_v7 = vpop.f32.mrb[85].mxu1 }
 0x548   :  { %v1601_v18 = vadd.f32 %v1600_v7, %v3274_v35  ;;  %v1602_v56 = vpop.f32.mrb[86].mxu1  ;;  %1951 = vmatprep.mubr.bf16.mxu0 %v1668_v53 }
 0x549   :  { %v1603_v19 = vadd.f32 %v1602_v56, %v3271_v34  ;;  %v1604_v57 = vpop.f32.mrb[87].mxu1  ;;  %1952 = vmatmul.mubr.bf16.gmra.mrb[80].mxu0 %v1667_v52  ;;  %v1647_v20 = vmax.f32 %v1599_v55, 0.0 }
 0x54a   :  { %v1605_v58 = vadd.f32 %v1604_v57, %v3274_v35  ;;  %v1648_v60 = vmax.f32 %v1601_v18, 0.0 }
 0x54b   :  { %v1649_v59 = vmax.f32 %v1603_v19, 0.0 }
 0x54c   :  { %v1650_v61 = vmax.f32 %v1605_v58, 0.0 }
 0x54d   :  { %v1669_v62 = vpack.c.bf16 %v1649_v59, %v1647_v20 }
 0x54e   :  { %v1670_v63 = vpack.c.bf16 %v1650_v61, %v1648_v60  ;;  %v1608_v29 = vpop.f32.mrb[88].mxu1 }
 0x54f   :  { %v1609_v21 = vadd.f32 %v1608_v29, %v3271_v34  ;;  %v1610_v22 = vpop.f32.mrb[89].mxu1 }
 0x550   :  { %v1611_v0 = vadd.f32 %v1610_v22, %v3274_v35  ;;  %v1612_v23 = vpop.f32.mrb[90].mxu1  ;;  %1961 = vmatprep.mubr.bf16.mxu0 %v1670_v63 }
 0x551   :  { %v1613_v1 = vadd.f32 %v1612_v23, %v3271_v34  ;;  %v1614_v2 = vpop.f32.mrb[91].mxu1  ;;  %1962 = vmatmul.mubr.bf16.gmra.mrb[84].mxu0 %v1669_v62  ;;  %v1651_v4 = vmax.f32 %v1609_v21, 0.0 }
 0x552   :  { %v1615_v24 = vadd.f32 %v1614_v2, %v3274_v35  ;;  %v1652_v10 = vmax.f32 %v1611_v0, 0.0 }
 0x553   :  { %v1653_v8 = vmax.f32 %v1613_v1, 0.0 }
 0x554   :  { %v1654_v37 = vmax.f32 %v1615_v24, 0.0 }
 0x555   :  { %v1671_v9 = vpack.c.bf16 %v1653_v8, %v1651_v4 }
 0x556   :  { %v1672_v13 = vpack.c.bf16 %v1654_v37, %v1652_v10  ;;  %v1618_v25 = vpop.f32.mrb[92].mxu1 }
 0x557   :  { %v1619_v26 = vadd.f32 %v1618_v25, %v3271_v34  ;;  %v1620_v38 = vpop.f32.mrb[93].mxu1 }
 0x558   :  { %v1621_v27 = vadd.f32 %v1620_v38, %v3274_v35  ;;  %v1622_v14 = vpop.f32.mrb[94].mxu1  ;;  %1971 = vmatprep.mubr.bf16.mxu1 %v1672_v13 }
 0x559   :  { %v1623_v39 = vadd.f32 %v1622_v14, %v3271_v34  ;;  %v1624_v28 = vpop.f32.mrb[95].mxu1  ;;  %1972 = vmatmul.mubr.bf16.vlgmr.msra.gmra.mrb[96].mxu1 %v1671_v9  ;;  %v1655_v11 = vmax.f32 %v1619_v26, 0.0  ;;  %v3315_v34 = vrot.slane %v1707_v31, %v3041_v5 }
 0x55a   :  { %v1625_v40 = vadd.f32 %v1624_v28, %v3274_v35  ;;  %v1656_v42 = vmax.f32 %v1621_v27, 0.0 }
 0x55b   :  { %v1657_v41 = vmax.f32 %v1623_v39, 0.0 }
 0x55c   :  { %v1658_v43 = vmax.f32 %v1625_v40, 0.0 }
 0x55d   :  { %v1673_v44 = vpack.c.bf16 %v1657_v41, %v1655_v11 }
 0x55e   :  { %v1674_v30 = vpack.c.bf16 %v1658_v43, %v1656_v42 }
 0x560   :  { %1981 = vmatprep.mubr.bf16.mxu1 %v1674_v30 }
 0x561   :  { %1982 = vmatmul.mubr.bf16.gmra.mrb[100].mxu1 %v1673_v44 }
 0x5fc   :  { %v1913_v32 = vpop.f32.mrb[64].mxu0 }
 0x5fd   :  { %v1914_v35 = vadd.f32 %v1913_v32, %v3312_v45  ;;  %v1915_v46 = vpop.f32.mrb[65].mxu0 }
 0x5fe   :  { %v1916_v33 = vadd.f32 %v1915_v46, %v3315_v34  ;;  %v1917_v12 = vpop.f32.mrb[66].mxu0 }
 0x5ff   :  { %v1992_v6 = vmax.f32 %v1914_v35, 0.0  ;;  %v1918_v15 = vadd.f32 %v1917_v12, %v3312_v45  ;;  %v1919_v36 = vpop.f32.mrb[67].mxu0 }
 0x600   :  { %v1993_v47 = vmax.f32 %v1916_v33, 0.0  ;;  %v1920_v16 = vadd.f32 %v1919_v36, %v3315_v34 }
 0x601   :  { %2024 = vst [vmem:[#allocation16] sm:$0xff] %v1992_v6  ;;  %v1994_v3 = vmax.f32 %v1918_v15, 0.0 }
 0x602   :  { %2025 = vst [vmem:[#allocation16 + $0x8] sm:$0xff] %v1993_v47  ;;  %v1995_v48 = vmax.f32 %v1920_v16, 0.0 }
 0x603   :  { %2026 = vst [vmem:[#allocation16 + $0x10] sm:$0xff] %v1994_v3 }
 0x604   :  { %2027 = vst [vmem:[#allocation16 + $0x18] sm:$0xff] %v1995_v48  ;;  %v1923_v5 = vpop.f32.mrb[68].mxu0 }
 0x605   :  { %v1924_v49 = vadd.f32 %v1923_v5, %v3312_v45  ;;  %v1925_v17 = vpop.f32.mrb[69].mxu0 }
 0x606   :  { %v1926_v50 = vadd.f32 %v1925_v17, %v3315_v34  ;;  %v1927_v51 = vpop.f32.mrb[70].mxu0 }
 0x607   :  { %v1996_v52 = vmax.f32 %v1924_v49, 0.0  ;;  %v1928_v53 = vadd.f32 %v1927_v51, %v3312_v45  ;;  %v1929_v54 = vpop.f32.mrb[71].mxu0 }
 0x608   :  { %v1997_v55 = vmax.f32 %v1926_v50, 0.0  ;;  %v1930_v7 = vadd.f32 %v1929_v54, %v3315_v34 }
 0x609   :  { %2028 = vst [vmem:[#allocation16 + $0x20] sm:$0xff] %v1996_v52  ;;  %v1998_v18 = vmax.f32 %v1928_v53, 0.0 }
 0x60a   :  { %2029 = vst [vmem:[#allocation16 + $0x28] sm:$0xff] %v1997_v55  ;;  %v1999_v56 = vmax.f32 %v1930_v7, 0.0 }
 0x60b   :  { %2030 = vst [vmem:[#allocation16 + $0x30] sm:$0xff] %v1998_v18 }
 0x60c   :  { %2031 = vst [vmem:[#allocation16 + $0x38] sm:$0xff] %v1999_v56  ;;  %v1933_v19 = vpop.f32.mrb[72].mxu0 }
 0x60d   :  { %v1934_v57 = vadd.f32 %v1933_v19, %v3312_v45  ;;  %v1935_v58 = vpop.f32.mrb[73].mxu0 }
 0x60e   :  { %v1936_v20 = vadd.f32 %v1935_v58, %v3315_v34  ;;  %v1937_v59 = vpop.f32.mrb[74].mxu0 }
 0x60f   :  { %v2000_v60 = vmax.f32 %v1934_v57, 0.0  ;;  %v1938_v61 = vadd.f32 %v1937_v59, %v3312_v45  ;;  %v1939_v62 = vpop.f32.mrb[75].mxu0 }
 0x610   :  { %v2001_v63 = vmax.f32 %v1936_v20, 0.0  ;;  %v1940_v29 = vadd.f32 %v1939_v62, %v3315_v34 }
 0x611   :  { %2032 = vst [vmem:[#allocation16 + $0x40] sm:$0xff] %v2000_v60  ;;  %v2002_v21 = vmax.f32 %v1938_v61, 0.0 }
 0x612   :  { %2033 = vst [vmem:[#allocation16 + $0x48] sm:$0xff] %v2001_v63  ;;  %v2003_v22 = vmax.f32 %v1940_v29, 0.0 }
 0x613   :  { %2034 = vst [vmem:[#allocation16 + $0x50] sm:$0xff] %v2002_v21 }
 0x614   :  { %2035 = vst [vmem:[#allocation16 + $0x58] sm:$0xff] %v2003_v22  ;;  %v1943_v0 = vpop.f32.mrb[76].mxu0 }
 0x615   :  { %v1944_v23 = vadd.f32 %v1943_v0, %v3312_v45  ;;  %v1945_v1 = vpop.f32.mrb[77].mxu0 }
 0x616   :  { %v1946_v2 = vadd.f32 %v1945_v1, %v3315_v34  ;;  %v1947_v24 = vpop.f32.mrb[78].mxu0 }
 0x617   :  { %v2004_v4 = vmax.f32 %v1944_v23, 0.0  ;;  %v1948_v8 = vadd.f32 %v1947_v24, %v3312_v45  ;;  %v1949_v10 = vpop.f32.mrb[79].mxu0 }
 0x618   :  { %v2005_v37 = vmax.f32 %v1946_v2, 0.0  ;;  %v1950_v9 = vadd.f32 %v1949_v10, %v3315_v34 }
 0x619   :  { %2036 = vst [vmem:[#allocation16 + $0x60] sm:$0xff] %v2004_v4  ;;  %v2006_v13 = vmax.f32 %v1948_v8, 0.0 }
 0x61a   :  { %2037 = vst [vmem:[#allocation16 + $0x68] sm:$0xff] %v2005_v37  ;;  %v2007_v25 = vmax.f32 %v1950_v9, 0.0 }
 0x61b   :  { %2038 = vst [vmem:[#allocation16 + $0x70] sm:$0xff] %v2006_v13 }
 0x61c   :  { %2039 = vst [vmem:[#allocation16 + $0x78] sm:$0xff] %v2007_v25  ;;  %v1953_v26 = vpop.f32.mrb[80].mxu0 }
 0x61d   :  { %v1954_v38 = vadd.f32 %v1953_v26, %v3312_v45  ;;  %v1955_v27 = vpop.f32.mrb[81].mxu0 }
 0x61e   :  { %v1956_v14 = vadd.f32 %v1955_v27, %v3315_v34  ;;  %v1957_v39 = vpop.f32.mrb[82].mxu0 }
 0x61f   :  { %v2008_v28 = vmax.f32 %v1954_v38, 0.0  ;;  %v1958_v40 = vadd.f32 %v1957_v39, %v3312_v45  ;;  %v1959_v11 = vpop.f32.mrb[83].mxu0 }
 0x620   :  { %v2009_v41 = vmax.f32 %v1956_v14, 0.0  ;;  %v1960_v42 = vadd.f32 %v1959_v11, %v3315_v34 }
 0x621   :  { %2040 = vst [vmem:[#allocation16 + $0x80] sm:$0xff] %v2008_v28  ;;  %v2010_v43 = vmax.f32 %v1958_v40, 0.0 }
 0x622   :  { %2041 = vst [vmem:[#allocation16 + $0x88] sm:$0xff] %v2009_v41  ;;  %v2011_v44 = vmax.f32 %v1960_v42, 0.0 }
 0x623   :  { %2042 = vst [vmem:[#allocation16 + $0x90] sm:$0xff] %v2010_v43 }
 0x624   :  { %2043 = vst [vmem:[#allocation16 + $0x98] sm:$0xff] %v2011_v44  ;;  %v1963_v30 = vpop.f32.mrb[84].mxu0 }
 0x625   :  { %v1964_v31 = vadd.f32 %v1963_v30, %v3312_v45  ;;  %v1965_v32 = vpop.f32.mrb[85].mxu0 }
 0x626   :  { %v1966_v35 = vadd.f32 %v1965_v32, %v3315_v34  ;;  %v1967_v46 = vpop.f32.mrb[86].mxu0 }
 0x627   :  { %v2012_v33 = vmax.f32 %v1964_v31, 0.0  ;;  %v1968_v12 = vadd.f32 %v1967_v46, %v3312_v45  ;;  %v1969_v6 = vpop.f32.mrb[87].mxu0 }
 0x628   :  { %v2013_v15 = vmax.f32 %v1966_v35, 0.0  ;;  %v1970_v36 = vadd.f32 %v1969_v6, %v3315_v34 }
 0x629   :  { %2044 = vst [vmem:[#allocation16 + $0xa0] sm:$0xff] %v2012_v33  ;;  %v2014_v47 = vmax.f32 %v1968_v12, 0.0 }
 0x62a   :  { %2045 = vst [vmem:[#allocation16 + $0xa8] sm:$0xff] %v2013_v15  ;;  %v2015_v16 = vmax.f32 %v1970_v36, 0.0 }
 0x62b   :  { %2046 = vst [vmem:[#allocation16 + $0xb0] sm:$0xff] %v2014_v47 }
 0x62c   :  { %2047 = vst [vmem:[#allocation16 + $0xb8] sm:$0xff] %v2015_v16  ;;  %v1973_v3 = vpop.f32.mrb[96].mxu1 }
 0x62d   :  { %v1974_v48 = vadd.f32 %v1973_v3, %v3312_v45  ;;  %v1975_v5 = vpop.f32.mrb[97].mxu1 }
 0x62e   :  { %v1976_v49 = vadd.f32 %v1975_v5, %v3315_v34  ;;  %v1977_v17 = vpop.f32.mrb[98].mxu1 }
 0x62f   :  { %v2016_v50 = vmax.f32 %v1974_v48, 0.0  ;;  %v1978_v51 = vadd.f32 %v1977_v17, %v3312_v45  ;;  %v1979_v52 = vpop.f32.mrb[99].mxu1 }
 0x630   :  { %v2017_v53 = vmax.f32 %v1976_v49, 0.0  ;;  %v1980_v54 = vadd.f32 %v1979_v52, %v3315_v34 }
 0x631   :  { %2048 = vst [vmem:[#allocation16 + $0xc0] sm:$0xff] %v2016_v50  ;;  %v2018_v55 = vmax.f32 %v1978_v51, 0.0 }
 0x632   :  { %2049 = vst [vmem:[#allocation16 + $0xc8] sm:$0xff] %v2017_v53  ;;  %v2019_v7 = vmax.f32 %v1980_v54, 0.0 }
 0x633   :  { %2050 = vst [vmem:[#allocation16 + $0xd0] sm:$0xff] %v2018_v55 }
 0x634   :  { %2051 = vst [vmem:[#allocation16 + $0xd8] sm:$0xff] %v2019_v7  ;;  %v1983_v18 = vpop.f32.mrb[100].mxu1 }
 0x635   :  { %v1984_v56 = vadd.f32 %v1983_v18, %v3312_v45  ;;  %v1985_v19 = vpop.f32.mrb[101].mxu1 }
 0x636   :  { %v1986_v57 = vadd.f32 %v1985_v19, %v3315_v34  ;;  %v1987_v58 = vpop.f32.mrb[102].mxu1 }
 0x637   :  { %v2020_v20 = vmax.f32 %v1984_v56, 0.0  ;;  %v1988_v59 = vadd.f32 %v1987_v58, %v3312_v45  ;;  %v1989_v60 = vpop.f32.mrb[103].mxu1 }
 0x638   :  { %v2021_v61 = vmax.f32 %v1986_v57, 0.0  ;;  %v1990_v62 = vadd.f32 %v1989_v60, %v3315_v34 }
 0x639   :  { %2052 = vst [vmem:[#allocation16 + $0xe0] sm:$0xff] %v2020_v20  ;;  %v2022_v63 = vmax.f32 %v1988_v59, 0.0 }
 0x63a   :  { %2053 = vst [vmem:[#allocation16 + $0xe8] sm:$0xff] %v2021_v61  ;;  %v2023_v29 = vmax.f32 %v1990_v62, 0.0 }
 0x63b   :  { %2054 = vst [vmem:[#allocation16 + $0xf0] sm:$0xff] %v2022_v63 }
 0x63c   :  { %2055 = vst [vmem:[#allocation16 + $0xf8] sm:$0xff] %v2023_v29 }
 0x63d   :  { %2785 = shalt.err (!%p2782_p12)
}
 0x63e   :  { %s2786_s29 = scalar_lea.hbm %s3374_s13, 4096 }
 0x63f   :  { %p2787_p13 = scmp.ne.s32.totalorder %s3374_s13, %s2786_s29  ;;  %p2790_p0 = scmp.lt.u32.totalorder %s2786_s29, %s3374_s13 }
 0x641   :  { %p2792_p1 = pnand %p2790_p0, %p2787_p13 }
 0x643   :  { %2795 = shalt.err (!%p2792_p1)
}
 0x644   :  { %s2822_s8 = smov 256   ;;  %s2823_s1 = smov 16  }
 0x645   :  { %2067 = dma.vmem_to_hbm [thread:$0]  %s2062_s25, 4096, %s3374_s13, [#allocation4], %s2822_s8, %s2822_s8, %s2823_s1  }
 0x646   :  { %2806 = dma.done.wait [#allocation4], 4096  }
 0x647   :  { %2807 = vsyncadd [#allocation4], 4294963200 }
 0x648   :  { %2071 = vsyncpa [#allocation3], 1 }
 0x649   :  { %2072 = vsyncpa [#allocation6], 1 }
 0x64a   :  { %2073 = vsyncpa [#allocation9], 1 }
 0x64b   :  { %2074 = vsyncpa [#allocation12], 1 }
 0x64c   :  { %2075 = vsyncpa [#allocation15], 1 }
 0x64d   :  { %2076 = vsyncpa [#allocation4], 1 }

</bundles_post_ra>
